<compile_context>
chip_gen: v7x
topology: tpu7x:2x2x1
jax: 0.10.0
libtpu: 0.0.40
codegen_flags: <defaults>
</compile_context>

<pallas_src>
import jax
import jax.numpy as jnp
from jax import lax
from jax.experimental import pallas as pl
from jax.experimental.pallas import tpu as pltpu


# ----------------------------------------------------------------------------
# Kernel
# ----------------------------------------------------------------------------
def _make_recon_kernel(H, W, *, with_halo, gate_dtype):
    """Build the kernel with static H/W geometry, halo mode and gate dtype."""
    HW = H * W

    def kernel(*refs):
        if with_halo:
            (x_ref, xprev_ref, xnext_ref, masks_ref, w_ref, shift_ref,
             o_ref, xbig_ref) = refs
        else:
            x_ref, masks_ref, w_ref, shift_ref, o_ref, xbig_ref = refs
            xprev_ref = xnext_ref = None

        C = x_ref.shape[1]
        MT = x_ref.shape[2]            # td * H * W   (lane axis of this tile)
        td = MT // HW                  # D-slabs per tile (static)

        x = x_ref[0]                   # (C, MT), native dtype, lane-dense

        # Precomputed 0/1 boundary masks (grid-invariant, built in wrapper):
        # rows: [w>0, w<W-1, h>0, h<H-1]
        m_wm = masks_ref[0:1, :]
        m_wp = masks_ref[1:2, :]
        m_hm = masks_ref[2:3, :]
        m_hp = masks_ref[3:4, :]

        # ---- write the 7 conv taps straight into the (7C, MT) MXU operand --
        # sublane-block order matches the w_big column blocks:
        #   [center, d-1, d+1, h-1, h+1, w-1, w+1]
        xbig_ref[pl.ds(0 * C, C), :] = x
        xbig_ref[pl.ds(3 * C, C), :] = pltpu.roll(x, shift=W, axis=1) * m_hm
        xbig_ref[pl.ds(4 * C, C), :] = pltpu.roll(x, shift=MT - W, axis=1) * m_hp
        xbig_ref[pl.ds(5 * C, C), :] = pltpu.roll(x, shift=1, axis=1) * m_wm
        xbig_ref[pl.ds(6 * C, C), :] = pltpu.roll(x, shift=MT - 1, axis=1) * m_wp

        # ---- D-neighbour taps: one-slab shift with halo / zero boundary ----
        if with_halo:
            dt = pl.program_id(1)
            nd = pl.num_programs(1)
            # halo index maps are clamped at the global D boundary -> zero them
            prev = jnp.where(dt > 0, xprev_ref[0], 0)          # (C, HW)
            nxt = jnp.where(dt < nd - 1, xnext_ref[0], 0)       # (C, HW)
        else:
            prev = jnp.zeros((C, HW), x.dtype)
            nxt = jnp.zeros((C, HW), x.dtype)
        if td > 1:
            # non-overlapping aligned lane-slice stores (no concat, no roll)
            xbig_ref[pl.ds(1 * C, C), pl.ds(0, HW)] = prev
            xbig_ref[pl.ds(1 * C, C), pl.ds(HW, MT - HW)] = x[:, 0:MT - HW]
            xbig_ref[pl.ds(2 * C, C), pl.ds(0, MT - HW)] = x[:, HW:MT]
            xbig_ref[pl.ds(2 * C, C), pl.ds(MT - HW, HW)] = nxt
        else:
            xbig_ref[pl.ds(1 * C, C), :] = prev
            xbig_ref[pl.ds(2 * C, C), :] = nxt

        # ---- one fused MXU matmul for all 9 conv taps of the 3 branches ----
        # (eval-mode BN scale and the tanh-form 0.5 are folded into w_ref.)
        y = jnp.dot(w_ref[...], xbig_ref[...],
                    preferred_element_type=jnp.float32)          # (3C, MT) f32

        # sigmoid(t) = 0.5 * tanh(t/2) + 0.5  -> a single EUP op per element
        t = y.astype(gate_dtype) + shift_ref[...]
        th = jnp.tanh(t)
        gate = (th[0:C, :] + th[C:2 * C, :] + th[2 * C:3 * C, :]) * 0.5 + 1.5
        o_ref[0] = (gate * x.astype(gate_dtype)).astype(o_ref.dtype)

    return kernel


# ----------------------------------------------------------------------------
# Parameter packing (module params -> fused kernel params)
# ----------------------------------------------------------------------------
def _pack_params(params, mxu_dtype, gate_dtype):
    """Fused block weight + shift with BN scale and the tanh 0.5 folded in.

    w_big columns are ordered like the scratch sublane blocks in the kernel:
      [center, d-1, d+1, h-1, h+1, w-1, w+1], each a (C, C) block.
    """
    w1, w2, w3, s1, t1, s2, t2, s3, t3 = params
    C = w1.shape[-1]
    Z = jnp.zeros((C, C), jnp.float32)

    r1 = jnp.concatenate([w1[1].T, w1[0].T, w1[2].T, Z, Z, Z, Z], axis=1)  # D branch
    r2 = jnp.concatenate([w2[1].T, Z, Z, w2[0].T, w2[2].T, Z, Z], axis=1)  # H branch
    r3 = jnp.concatenate([w3[1].T, Z, Z, Z, Z, w3[0].T, w3[2].T], axis=1)  # W branch
    w_big = jnp.concatenate([r1, r2, r3], axis=0).astype(jnp.float32)      # (3C, 7C)

    scale = jnp.concatenate([s1, s2, s3]).reshape(3 * C, 1).astype(jnp.float32)
    shift = jnp.concatenate([t1, t2, t3]).reshape(3 * C, 1).astype(jnp.float32)

    # sigmoid(s*y + t) = 0.5*tanh(0.5*s*y + 0.5*t) + 0.5  -> fold 0.5*s into w
    w_big = (w_big * (0.5 * scale)).astype(mxu_dtype)
    shift_half = (0.5 * shift).astype(gate_dtype)
    return w_big, shift_half


# ----------------------------------------------------------------------------
# Generation-aware tiling helpers
# ----------------------------------------------------------------------------
def _device_kind():
    try:
        return jax.devices()[0].device_kind.lower()
    except Exception:
        return ""


def _tpu_vmem_capacity_bytes():
    try:
        info_fn = getattr(pltpu, "get_tpu_info", None)
        if info_fn is not None:
            cap = int(getattr(info_fn(), "vmem_capacity_bytes", 0))
            if cap > 0:
                return cap
    except Exception:
        pass
    kind = _device_kind()
    if ("v4" in kind) or ("v5" in kind) or ("v6" in kind):
        return 128 << 20
    return 64 << 20   # conservative default (v7x-class: 64 MiB per TC)


def _choose_td(D, C, HW, itemsize, gsize, budget, *, want_multi, target_center):
    """Largest D-tile (in slabs) whose per-step VMEM footprint fits the budget."""
    slab_bytes = C * HW * itemsize

    def est(td):
        MT = td * HW
        nd = -(-D // td)
        io = 4 * C * MT * itemsize                       # dbl-buffered in + out
        halo = (4 * C * HW * itemsize) if nd > 1 else 0  # dbl-buffered halos
        scr = 7 * C * MT * itemsize                      # MXU operand scratch
        temps = C * MT * (3 * 4 + 8 * gsize)             # y (f32) + gate temps
        return io + halo + scr + temps + (4 << 20)       # + params/masks/slack

    td = max(1, min(D, target_center // max(slab_bytes, 1)))
    if want_multi and D >= 2:
        td = min(td, (D + 1) // 2)     # keep >=2 parallel D-tiles (v7x, 2 TCs)
    while td > 1 and est(td) > budget:
        td -= 1
    # prefer an exact divisor of D close below (avoids zero-padding D)
    for cand in range(td, max(td // 2, 1) - 1, -1):
        if D % cand == 0:
            return cand
    return td


# ----------------------------------------------------------------------------
# Wrapper
# ----------------------------------------------------------------------------
def recon_block(x, params, *, td=None, gate_bf16=None):
    """ReconBlock forward.

    x: (N, C, D, H, W), float32 or bfloat16 (dense NCDHW voxel features).
    params: (w1, w2, w3, s1, t1, s2, t2, s3, t3) - three (3, C, C) conv taps
            (Cin, Cout per tap) and three folded BN (scale, shift) vectors (C,).
    td: D-slabs per grid tile (auto-chosen if None; D is zero-padded if needed).
    gate_bf16: run post-matmul gate math in bf16 (auto: bf16 input on v6e/v7x).
    """
    assert x.ndim == 5, "expected (N, C, D, H, W)"
    assert x.dtype in (jnp.float32, jnp.bfloat16)
    N, C, D, H, W = x.shape
    HW = H * W
    assert HW % 128 == 0, "H*W must be a multiple of 128 (TPU lane tiling)"
    bf16_in = (x.dtype == jnp.bfloat16)
    assert C % (16 if bf16_in else 8) == 0, "C must be sublane aligned"

    itemsize = jnp.dtype(x.dtype).itemsize
    kind = _device_kind()
    capacity = _tpu_vmem_capacity_bytes()
    budget = (capacity * 3) // 4                     # 48 MiB @64, 96 MiB @128

    if gate_bf16 is None:
        gate_bf16 = bf16_in and (("v6" in kind) or ("v7" in kind))
    gate_dtype = jnp.bfloat16 if gate_bf16 else jnp.float32
    gsize = jnp.dtype(gate_dtype).itemsize
    mxu_dtype = jnp.bfloat16 if bf16_in else jnp.float32

    # --- tile size along D (generation aware) ------------------------------
    target_center = (4 << 20) if capacity >= (96 << 20) else (2 << 20)
    if td is None:
        td = _choose_td(D, C, HW, itemsize, gsize, budget,
                        want_multi=(("v7" in kind) and N == 1),
                        target_center=target_center)
    td = max(1, min(int(td), D))
    nd = -(-D // td)                 # cdiv
    D_pad = nd * td                  # zero-pad D if td does not divide it
    MT = td * HW
    M_pad = D_pad * HW
    with_halo = nd > 1

    # --- host-side packing --------------------------------------------------
    w_big, shift_half = _pack_params(params, mxu_dtype, gate_dtype)

    lane = jnp.arange(MT, dtype=jnp.int32)
    w_idx = lane % W
    h_idx = (lane // W) % H
    masks = jnp.stack([w_idx > 0, w_idx < W - 1,
                       h_idx > 0, h_idx < H - 1]).astype(x.dtype)   # (4, MT)

    if D_pad != D:
        # zero-padding extra D slabs is exact for a zero-padded conv; the
        # padded output slabs are sliced off below.
        xg = jnp.pad(x, ((0, 0), (0, 0), (0, D_pad - D), (0, 0), (0, 0)))
    else:
        xg = x
    xf = xg.reshape(N, C, M_pad)

    # --- block specs ---------------------------------------------------------
    x_spec = pl.BlockSpec((1, C, MT), lambda n, dt: (n, 0, dt))
    o_spec = pl.BlockSpec((1, C, MT), lambda n, dt: (n, 0, dt))
    masks_spec = pl.BlockSpec((4, MT), lambda n, dt: (0, 0))
    w_spec = pl.BlockSpec((3 * C, 7 * C), lambda n, dt: (0, 0))
    shift_spec = pl.BlockSpec((3 * C, 1), lambda n, dt: (0, 0))

    operands = [xf]
    in_specs = [x_spec]
    if with_halo:
        # one-slab halos (block = one D slab along the flat spatial axis);
        # clamped at the global boundary, masked to zero inside the kernel.
        prev_spec = pl.BlockSpec(
            (1, C, HW), lambda n, dt: (n, 0, jnp.maximum(dt * td - 1, 0)))
        next_spec = pl.BlockSpec(
            (1, C, HW), lambda n, dt: (n, 0, jnp.minimum(dt * td + td, D_pad - 1)))
        operands += [xf, xf]
        in_specs += [prev_spec, next_spec]
    operands += [masks, w_big, shift_half]
    in_specs += [masks_spec, w_spec, shift_spec]

    # --- VMEM budget & cost hint --------------------------------------------
    est = ((4 * C * MT + (4 * C * HW if with_halo else 0)) * itemsize
           + 7 * C * MT * itemsize
           + C * MT * (12 + 8 * gsize)
           + (4 << 20))
    vmem_limit = int(min(max(32 << 20, 2 * est), budget))

    cost = pl.CostEstimate(
        flops=int(2 * (3 * C) * (7 * C) * N * M_pad),
        transcendentals=int(3 * C * N * M_pad),
        bytes_accessed=int(2 * N * C * M_pad * itemsize
                           + (4 * N * nd * C * HW * itemsize if with_halo else 0)
                           + int(w_big.size) * jnp.dtype(mxu_dtype).itemsize
                           + 3 * C * gsize + 4 * MT * itemsize),
    )

    out = pl.pallas_call(
        _make_recon_kernel(H, W, with_halo=with_halo, gate_dtype=gate_dtype),
        out_shape=jax.ShapeDtypeStruct((N, C, M_pad), x.dtype),
        grid_spec=pltpu.PrefetchScalarGridSpec(
            num_scalar_prefetch=0,
            grid=(N, nd),
            in_specs=in_specs,
            out_specs=o_spec,
            scratch_shapes=[pltpu.VMEM((7 * C, MT), x.dtype)],
        ),
        compiler_params=pltpu.CompilerParams(
            dimension_semantics=("parallel", "parallel"),
            vmem_limit_bytes=vmem_limit,
        ),
        cost_estimate=cost,
    )(*operands)

    out = out.reshape(N, C, D_pad, H, W)
    if D_pad != D:
        out = out[:, :, :D]
    return out


# ----------------------------------------------------------------------------
# Synthetic parameters + plain-JAX reference
# ----------------------------------------------------------------------------
def init_params(key, c):
    """Deterministic synthetic parameters (shapes from ReconBlock.__init__)."""
    ks = jax.random.split(key, 15)

    def conv_w(k):
        # 3 kernel taps, each (C_in, C_out); bias=False in the module.
        return jax.random.normal(k, (3, c, c), jnp.float32) / jnp.sqrt(3.0 * c)

    def bn(kg, kb, km, kv):
        gamma = 1.0 + 0.1 * jax.random.normal(kg, (c,), jnp.float32)
        beta = 0.1 * jax.random.normal(kb, (c,), jnp.float32)
        mean = 0.1 * jax.random.normal(km, (c,), jnp.float32)
        var = jax.nn.softplus(jax.random.normal(kv, (c,), jnp.float32)) + 0.5
        scale = gamma * lax.rsqrt(var + 1e-5)       # BatchNorm1d eps default
        shift = beta - mean * scale
        return scale, shift

    w1, w2, w3 = conv_w(ks[0]), conv_w(ks[1]), conv_w(ks[2])
    s1, t1 = bn(ks[3], ks[4], ks[5], ks[6])
    s2, t2 = bn(ks[7], ks[8], ks[9], ks[10])
    s3, t3 = bn(ks[11], ks[12], ks[13], ks[14])
    return (w1, w2, w3, s1, t1, s2, t2, s3, t3)


def recon_block_ref(x, params):
    """Plain-JAX reference (dense NCDHW) for correctness checking."""
    w1, w2, w3, s1, t1, s2, t2, s3, t3 = params

    def branch(w, s, t, axis):
        pads = [(0, 0)] * 5
        pads[axis] = (1, 1)
        xp = jnp.pad(x, pads)
        L = x.shape[axis]
        y = sum(jnp.einsum('ncdhw,co->nodhw',
                           lax.slice_in_dim(xp, k, k + L, axis=axis), w[k])
                for k in range(3))
        y = y * s.reshape(1, -1, 1, 1, 1) + t.reshape(1, -1, 1, 1, 1)
        return jax.nn.sigmoid(y)

    b1 = branch(w1, s1, t1, 2)   # conv3x1x1: kernel along D
    b2 = branch(w2, s2, t2, 3)   # conv1x3x1: kernel along H
    b3 = branch(w3, s3, t3, 4)   # conv1x1x3: kernel along W
    return (b1 + b2 + b3) * x


# ----------------------------------------------------------------------------
if __name__ == "__main__":
    key = jax.random.PRNGKey(0)
    kx, kp = jax.random.split(key)

    # ReconNet in Spconv_alsaNet_res sees 2*init_size = 32 channels.
    N, C, D, H, W = 2, 32, 8, 16, 8
    x = jax.random.normal(kx, (N, C, D, H, W), jnp.float32)
    params = init_params(kp, C)
    ref = recon_block_ref(x, params)

    # f32, multi-tile along D (exercises halo DMAs + global-boundary masking)
    out = jax.block_until_ready(recon_block(x, params, td=2))
    assert out.shape == x.shape
    err = float(jnp.max(jnp.abs(out - ref)))
    if err > 5e-4:
        raise AssertionError(f"f32 (td=2) mismatch vs reference, max err {err}")

    # f32, auto tile size (single D tile -> halo-free kernel specialization)
    out2 = jax.block_until_ready(recon_block(x, params))
    err2 = float(jnp.max(jnp.abs(out2 - ref)))
    if err2 > 5e-4:
        raise AssertionError(f"f32 (auto tile) mismatch vs reference, max err {err2}")

    # bf16 I/O, td=3 does not divide D -> exercises the zero-padded remainder
    # tile, the halo path and (on v6e/v7x) bf16 gate math.
    xb = x.astype(jnp.bfloat16)
    outb = jax.block_until_ready(recon_block(xb, params, td=3)).astype(jnp.float32)
    refb = recon_block_ref(xb.astype(jnp.float32), params)
    merr = float(jnp.mean(jnp.abs(outb - refb)))
    if merr > 0.05:
        raise AssertionError(f"bf16 path mismatch vs reference, mean err {merr}")

    print("KERNEL_OK")
</pallas_src>

<mosaic_0001>
module attributes {stable_mosaic.version = 11 : i64} {
  func.func @kernel(%arg0: i32, %arg1: i32, %arg2: memref<1x32x256xf32, #tpu.memory_space<vmem>>, %arg3: memref<1x32x128xf32, #tpu.memory_space<vmem>>, %arg4: memref<1x32x128xf32, #tpu.memory_space<vmem>>, %arg5: memref<4x256xf32, #tpu.memory_space<vmem>>, %arg6: memref<96x224xf32, #tpu.memory_space<vmem>>, %arg7: memref<96x1xf32, #tpu.memory_space<vmem>>, %arg8: memref<1x32x256xf32, #tpu.memory_space<vmem>>, %arg9: memref<224x256xf32, #tpu.memory_space<vmem>>) attributes {dimension_semantics = [#tpu.dimension_semantics<parallel>, #tpu.dimension_semantics<parallel>], iteration_bounds = array<i64: 2, 4>, scalar_prefetch = 0 : i64, scratch_operands = 1 : i64, tpu.core_type = #tpu.core_type<tc>, window_params = [{transform_indices = @transform_0, window_bounds = array<i64: 1, 32, 256>}, {transform_indices = @transform_1, window_bounds = array<i64: 1, 32, 128>}, {transform_indices = @transform_2, window_bounds = array<i64: 1, 32, 128>}, {pipeline_mode = #tpu.pipeline_mode<synchronous>, transform_indices = @transform_3, window_bounds = array<i64: 4, 256>}, {pipeline_mode = #tpu.pipeline_mode<synchronous>, transform_indices = @transform_4, window_bounds = array<i64: 96, 224>}, {pipeline_mode = #tpu.pipeline_mode<synchronous>, transform_indices = @transform_5, window_bounds = array<i64: 96, 1>}, {transform_indices = @transform_6, window_bounds = array<i64: 1, 32, 256>}]} {
    %c0 = arith.constant 0 : index
    %c0_0 = arith.constant 0 : index
    %c0_1 = arith.constant 0 : index
    %0 = vector.load %arg2[%c0, %c0_0, %c0_1] : memref<1x32x256xf32, #tpu.memory_space<vmem>>, vector<1x32x256xf32>
    %1 = vector.shape_cast %0 : vector<1x32x256xf32> to vector<32x256xf32>
    %c0_2 = arith.constant 0 : index
    %c0_3 = arith.constant 0 : index
    %2 = vector.load %arg5[%c0_2, %c0_3] : memref<4x256xf32, #tpu.memory_space<vmem>>, vector<1x256xf32>
    %c1 = arith.constant 1 : index
    %c0_4 = arith.constant 0 : index
    %3 = vector.load %arg5[%c1, %c0_4] : memref<4x256xf32, #tpu.memory_space<vmem>>, vector<1x256xf32>
    %c2 = arith.constant 2 : index
    %c0_5 = arith.constant 0 : index
    %4 = vector.load %arg5[%c2, %c0_5] : memref<4x256xf32, #tpu.memory_space<vmem>>, vector<1x256xf32>
    %c3 = arith.constant 3 : index
    %c0_6 = arith.constant 0 : index
    %5 = vector.load %arg5[%c3, %c0_6] : memref<4x256xf32, #tpu.memory_space<vmem>>, vector<1x256xf32>
    %c0_7 = arith.constant 0 : index
    %c0_8 = arith.constant 0 : index
    %6 = vector.load %arg9[%c0_7, %c0_8] : memref<224x256xf32, #tpu.memory_space<vmem>>, vector<32x256xf32>
    tpu.vector_store %arg9[%c0_7, %c0_8], %1 {strides = array<i32>} : memref<224x256xf32, #tpu.memory_space<vmem>>, vector<32x256xf32>,
    %c8_i32 = arith.constant 8 : i32
    %7 = tpu.dynamic_rotate %1 by %c8_i32 dim 1 : vector<32x256xf32>, i32 -> vector<32x256xf32>
    %8 = vector.broadcast %4 : vector<1x256xf32> to vector<32x256xf32>
    %9 = arith.mulf %7, %8 : vector<32x256xf32>
    %c96 = arith.constant 96 : index
    %c0_9 = arith.constant 0 : index
    %10 = vector.load %arg9[%c96, %c0_9] : memref<224x256xf32, #tpu.memory_space<vmem>>, vector<32x256xf32>
    tpu.vector_store %arg9[%c96, %c0_9], %9 {strides = array<i32>} : memref<224x256xf32, #tpu.memory_space<vmem>>, vector<32x256xf32>,
    %c248_i32 = arith.constant 248 : i32
    %11 = tpu.dynamic_rotate %1 by %c248_i32 dim 1 : vector<32x256xf32>, i32 -> vector<32x256xf32>
    %12 = vector.broadcast %5 : vector<1x256xf32> to vector<32x256xf32>
    %13 = arith.mulf %11, %12 : vector<32x256xf32>
    %c128 = arith.constant 128 : index
    %c0_10 = arith.constant 0 : index
    %14 = vector.load %arg9[%c128, %c0_10] : memref<224x256xf32, #tpu.memory_space<vmem>>, vector<32x256xf32>
    tpu.vector_store %arg9[%c128, %c0_10], %13 {strides = array<i32>} : memref<224x256xf32, #tpu.memory_space<vmem>>, vector<32x256xf32>,
    %c1_i32 = arith.constant 1 : i32
    %15 = tpu.dynamic_rotate %1 by %c1_i32 dim 1 : vector<32x256xf32>, i32 -> vector<32x256xf32>
    %16 = vector.broadcast %2 : vector<1x256xf32> to vector<32x256xf32>
    %17 = arith.mulf %15, %16 : vector<32x256xf32>
    %c160 = arith.constant 160 : index
    %c0_11 = arith.constant 0 : index
    %18 = vector.load %arg9[%c160, %c0_11] : memref<224x256xf32, #tpu.memory_space<vmem>>, vector<32x256xf32>
    tpu.vector_store %arg9[%c160, %c0_11], %17 {strides = array<i32>} : memref<224x256xf32, #tpu.memory_space<vmem>>, vector<32x256xf32>,
    %c255_i32 = arith.constant 255 : i32
    %19 = tpu.dynamic_rotate %1 by %c255_i32 dim 1 : vector<32x256xf32>, i32 -> vector<32x256xf32>
    %20 = vector.broadcast %3 : vector<1x256xf32> to vector<32x256xf32>
    %21 = arith.mulf %19, %20 : vector<32x256xf32>
    %c192 = arith.constant 192 : index
    %c0_12 = arith.constant 0 : index
    %22 = vector.load %arg9[%c192, %c0_12] : memref<224x256xf32, #tpu.memory_space<vmem>>, vector<32x256xf32>
    tpu.vector_store %arg9[%c192, %c0_12], %21 {strides = array<i32>} : memref<224x256xf32, #tpu.memory_space<vmem>>, vector<32x256xf32>,
    %c0_i32 = arith.constant 0 : i32
    %23 = arith.cmpi sgt, %arg1, %c0_i32 : i32
    %c0_13 = arith.constant 0 : index
    %c0_14 = arith.constant 0 : index
    %c0_15 = arith.constant 0 : index
    %24 = vector.load %arg3[%c0_13, %c0_14, %c0_15] : memref<1x32x128xf32, #tpu.memory_space<vmem>>, vector<1x32x128xf32>
    %25 = vector.shape_cast %24 : vector<1x32x128xf32> to vector<32x128xf32>
    %c0_i32_16 = arith.constant 0 : i32
    %26 = arith.sitofp %c0_i32_16 : i32 to f32
    %27 = vector.broadcast %26 : f32 to vector<32x128xf32>
    %28 = arith.select %23, %25, %27 : vector<32x128xf32>
    %c3_i32 = arith.constant 3 : i32
    %29 = arith.cmpi slt, %arg1, %c3_i32 : i32
    %c0_17 = arith.constant 0 : index
    %c0_18 = arith.constant 0 : index
    %c0_19 = arith.constant 0 : index
    %30 = vector.load %arg4[%c0_17, %c0_18, %c0_19] : memref<1x32x128xf32, #tpu.memory_space<vmem>>, vector<1x32x128xf32>
    %31 = vector.shape_cast %30 : vector<1x32x128xf32> to vector<32x128xf32>
    %c0_i32_20 = arith.constant 0 : i32
    %32 = arith.sitofp %c0_i32_20 : i32 to f32
    %33 = vector.broadcast %32 : f32 to vector<32x128xf32>
    %34 = arith.select %29, %31, %33 : vector<32x128xf32>
    %c32 = arith.constant 32 : index
    %c0_21 = arith.constant 0 : index
    %35 = vector.load %arg9[%c32, %c0_21] : memref<224x256xf32, #tpu.memory_space<vmem>>, vector<32x128xf32>
    tpu.vector_store %arg9[%c32, %c0_21], %28 {strides = array<i32>} : memref<224x256xf32, #tpu.memory_space<vmem>>, vector<32x128xf32>,
    %36 = vector.extract_strided_slice %1 {offsets = [0, 0], sizes = [32, 128], strides = [1, 1]} : vector<32x256xf32> to vector<32x128xf32>
    %c32_22 = arith.constant 32 : index
    %c128_23 = arith.constant 128 : index
    %37 = vector.load %arg9[%c32_22, %c128_23] : memref<224x256xf32, #tpu.memory_space<vmem>>, vector<32x128xf32>
    tpu.vector_store %arg9[%c32_22, %c128_23], %36 {strides = array<i32>} : memref<224x256xf32, #tpu.memory_space<vmem>>, vector<32x128xf32>,
    %38 = vector.extract_strided_slice %1 {offsets = [0, 128], sizes = [32, 128], strides = [1, 1]} : vector<32x256xf32> to vector<32x128xf32>
    %c64 = arith.constant 64 : index
    %c0_24 = arith.constant 0 : index
    %39 = vector.load %arg9[%c64, %c0_24] : memref<224x256xf32, #tpu.memory_space<vmem>>, vector<32x128xf32>
    tpu.vector_store %arg9[%c64, %c0_24], %38 {strides = array<i32>} : memref<224x256xf32, #tpu.memory_space<vmem>>, vector<32x128xf32>,
    %c64_25 = arith.constant 64 : index
    %c128_26 = arith.constant 128 : index
    %40 = vector.load %arg9[%c64_25, %c128_26] : memref<224x256xf32, #tpu.memory_space<vmem>>, vector<32x128xf32>
    tpu.vector_store %arg9[%c64_25, %c128_26], %34 {strides = array<i32>} : memref<224x256xf32, #tpu.memory_space<vmem>>, vector<32x128xf32>,
    %c0_27 = arith.constant 0 : index
    %c0_28 = arith.constant 0 : index
    %41 = vector.load %arg6[%c0_27, %c0_28] : memref<96x224xf32, #tpu.memory_space<vmem>>, vector<96x224xf32>
    %c0_29 = arith.constant 0 : index
    %c0_30 = arith.constant 0 : index
    %42 = vector.load %arg9[%c0_29, %c0_30] : memref<224x256xf32, #tpu.memory_space<vmem>>, vector<224x256xf32>
    %cst = arith.constant dense<0.000000e+00> : vector<96x256xf32>
    %43 = tpu.matmul %41, %42, %cst {dimension_numbers = #tpu.dot_dimension_numbers<[1], [0], [0], [1], [0, 0, 1, 1], [], []>} : vector<96x224xf32>, vector<224x256xf32>, vector<96x256xf32> -> vector<96x256xf32>
    %c0_31 = arith.constant 0 : index
    %c0_32 = arith.constant 0 : index
    %44 = vector.load %arg7[%c0_31, %c0_32] : memref<96x1xf32, #tpu.memory_space<vmem>>, vector<96x1xf32>
    %45 = vector.broadcast %44 : vector<96x1xf32> to vector<96x256xf32>
    %46 = arith.addf %43, %45 : vector<96x256xf32>
    %47 = math.tanh %46 : vector<96x256xf32>
    %48 = vector.extract_strided_slice %47 {offsets = [0, 0], sizes = [32, 256], strides = [1, 1]} : vector<96x256xf32> to vector<32x256xf32>
    %49 = vector.extract_strided_slice %47 {offsets = [32, 0], sizes = [32, 256], strides = [1, 1]} : vector<96x256xf32> to vector<32x256xf32>
    %50 = arith.addf %48, %49 : vector<32x256xf32>
    %51 = vector.extract_strided_slice %47 {offsets = [64, 0], sizes = [32, 256], strides = [1, 1]} : vector<96x256xf32> to vector<32x256xf32>
    %52 = arith.addf %50, %51 : vector<32x256xf32>
    %cst_33 = arith.constant 5.000000e-01 : f32
    %53 = vector.broadcast %cst_33 : f32 to vector<32x256xf32>
    %54 = arith.mulf %52, %53 : vector<32x256xf32>
    %cst_34 = arith.constant 1.500000e+00 : f32
    %55 = vector.broadcast %cst_34 : f32 to vector<32x256xf32>
    %56 = arith.addf %54, %55 : vector<32x256xf32>
    %57 = arith.mulf %56, %1 : vector<32x256xf32>
    %c0_35 = arith.constant 0 : index
    %c0_36 = arith.constant 0 : index
    %c0_37 = arith.constant 0 : index
    %58 = vector.load %arg8[%c0_35, %c0_36, %c0_37] : memref<1x32x256xf32, #tpu.memory_space<vmem>>, vector<1x32x256xf32>
    %59 = vector.shape_cast %58 : vector<1x32x256xf32> to vector<32x256xf32>
    %60 = vector.shape_cast %57 : vector<32x256xf32> to vector<1x32x256xf32>
    tpu.vector_store %arg8[%c0_35, %c0_36, %c0_37], %60 {strides = array<i32>} : memref<1x32x256xf32, #tpu.memory_space<vmem>>, vector<1x32x256xf32>,
    return
  }
  func.func @transform_0(%arg0: i32, %arg1: i32) -> (i32, i32, i32) {
    %c0_i32 = arith.constant 0 : i32
    %c0_i32_0 = arith.constant 0 : i32
    return %arg0, %c0_i32, %arg1 : i32, i32, i32
  }
  func.func @transform_1(%arg0: i32, %arg1: i32) -> (i32, i32, i32) {
    %c2_i32 = arith.constant 2 : i32
    %0 = arith.muli %arg1, %c2_i32 : i32
    %c1_i32 = arith.constant 1 : i32
    %1 = arith.subi %0, %c1_i32 : i32
    %c0_i32 = arith.constant 0 : i32
    %2 = arith.maxsi %1, %c0_i32 : i32
    %c0_i32_0 = arith.constant 0 : i32
    %c0_i32_1 = arith.constant 0 : i32
    return %arg0, %c0_i32_0, %2 : i32, i32, i32
  }
  func.func @transform_2(%arg0: i32, %arg1: i32) -> (i32, i32, i32) {
    %c2_i32 = arith.constant 2 : i32
    %0 = arith.muli %arg1, %c2_i32 : i32
    %c2_i32_0 = arith.constant 2 : i32
    %1 = arith.addi %0, %c2_i32_0 : i32
    %c7_i32 = arith.constant 7 : i32
    %2 = arith.minsi %1, %c7_i32 : i32
    %c0_i32 = arith.constant 0 : i32
    %c0_i32_1 = arith.constant 0 : i32
    return %arg0, %c0_i32, %2 : i32, i32, i32
  }
  func.func @transform_3(%arg0: i32, %arg1: i32) -> (i32, i32) {
    %c0_i32 = arith.constant 0 : i32
    %c0_i32_0 = arith.constant 0 : i32
    %c0_i32_1 = arith.constant 0 : i32
    return %c0_i32, %c0_i32_0 : i32, i32
  }
  func.func @transform_4(%arg0: i32, %arg1: i32) -> (i32, i32) {
    %c0_i32 = arith.constant 0 : i32
    %c0_i32_0 = arith.constant 0 : i32
    %c0_i32_1 = arith.constant 0 : i32
    return %c0_i32, %c0_i32_0 : i32, i32
  }
  func.func @transform_5(%arg0: i32, %arg1: i32) -> (i32, i32) {
    %c0_i32 = arith.constant 0 : i32
    %c0_i32_0 = arith.constant 0 : i32
    %c0_i32_1 = arith.constant 0 : i32
    return %c0_i32, %c0_i32_0 : i32, i32
  }
  func.func @transform_6(%arg0: i32, %arg1: i32) -> (i32, i32, i32) {
    %c0_i32 = arith.constant 0 : i32
    %c0_i32_0 = arith.constant 0 : i32
    return %arg0, %c0_i32, %arg1 : i32, i32, i32
  }
}

</mosaic_0001>

<bundles_post_ra>
// kernel: tpu_custom_call.1
= control target key start
LH: loop header
LB: loop body
LE: loop exit
PB: predicated region body
PF: predicated region fallthrough
CT: control target
= control target key end

     0   :  { %s2691_s0 = inlined_call_operand.hbm [shape: f32[2,32,1024], index: 0, kind: input, shape index: {}]   ;;  %s2692_s1 = inlined_call_operand.hbm [shape: f32[2,32,1024], index: 1, kind: input, shape index: {}]   ;;  %s2693_s2 = inlined_call_operand.hbm [shape: f32[2,32,1024], index: 2, kind: input, shape index: {}]   ;;  %s2694_s3 = inlined_call_operand.vmem [shape: f32[4,256], index: 3, kind: input, shape index: {}]   ;;  %s2695_s4 = inlined_call_operand.hbm [shape: f32[96,224], index: 4, kind: input, shape index: {}]   ;;  %s2696_s5 = inlined_call_operand.vmem [shape: f32[96,1], index: 5, kind: input, shape index: {}]   ;;  %s2697_s6 = inlined_call_operand.hbm [shape: f32[2,32,1024], index: 6, kind: output, shape index: {}]  }
   0x1   :  { %2729 = sst [smem:[#allocation30_spill]] %s2691_s0 }
   0x2   :  { %2730 = sst [smem:[#allocation31_spill]] %s2692_s1 }
   0x3   :  { %2731 = sst [smem:[#allocation32_spill]] %s2693_s2 }
   0x4   :  { %2732 = sst [smem:[#allocation33_spill]] %s2694_s3 }
   0x5   :  { %2733 = sst [smem:[#allocation34_spill]] %s2695_s4 }
   0x6   :  { %2734 = sst [smem:[#allocation35_spill]] %s2696_s5 }
   0x7   :  { %2735 = sst [smem:[#allocation36_spill]] %s2697_s6 }
   0x8   :  { %11 = vsyncpa [#allocation4], 0 }
   0x9   :  { %13 = vsyncpa [#allocation4 + $0x1], 0 }
   0xa   :  { %14 = vsyncpa [#allocation7], 0 }
   0xb   :  { %16 = vsyncpa [#allocation7 + $0x1], 0 }
   0xc   :  { %17 = vsyncpa [#allocation10], 0 }
   0xd   :  { %18 = vsyncpa [#allocation5], 0 }
   0xe   :  { %20 = vsyncpa [#allocation5 + $0x1], 0  ;;  %s1942_s21 = smov 0   ;;  %s1944_s22 = smov 0  }
   0xf   :  { %s1946_s23 = smov 0   ;;  %s1948_s24 = smov 0  }
  0x10   :  { %s1950_s25 = smov 0   ;;  %s1952_s26 = smov 0  }
  0x11   :  { %s1954_s27 = smov 0   ;;  %s1956_s28 = smov 0  }
  0x12   :  { %s1958_s29 = smov 0   ;;  %s1960_s30 = smov 0  }
  0x13   :  { %s1962_s7 = smov 0   ;;  %s1964_s8 = smov 0  }
  0x14   :  { %s1966_s9 = smov 0   ;;  %s1968_s10 = smov 0  }
  0x15 LB: > { %2736 = sst [smem:[#allocation17_spill]] %s1843_s23  ;;  %s35_s11 = sadd.s32 1, %s1879_s8  ;;  %s1887_s10 = sphi %s1968_s10, %s26_s10   ;;  %s1883_s9 = sphi %s1966_s9, %s2811_s9   ;;  %s1879_s8 = sphi %s1964_s8, %s2810_s8   ;;  %s1875_s7 = sphi %s1962_s7, %s2809_s7   ;;  %s1871_s30 = sphi %s1960_s30, %s2808_s30   ;;  %s1867_s29 = sphi %s1958_s29, %s2819_s29   ;;  %s1863_s28 = sphi %s1956_s28, %s2818_s28   ;;  %s1859_s27 = sphi %s1954_s27, %s2817_s27   ;;  %s1855_s26 = sphi %s1952_s26, %s2805_s26   ;;  %s1851_s25 = sphi %s1950_s25, %s2816_s25   ;;  %s1847_s24 = sphi %s1948_s24, %s2815_s24   ;;  %s1843_s23 = sphi %s1946_s23, %s2814_s23   ;;  %s1839_s22 = sphi %s1944_s22, %s2813_s22   ;;  %s1835_s21 = sphi %s1942_s21, %s2812_s21  }
  0x16   : > { %2737 = sst [smem:[#allocation18_spill]] %s1855_s26  ;;  %s38_s12 = sadd.s32 1, %s1883_s9 }
  0x17   : > { %2738 = sst [smem:[#allocation19_spill]] %s1859_s27  ;;  %p36_p0 = scmp.ge.s32.totalorder %s35_s11, 4 }
  0x18   : > { %2739 = sst [smem:[#allocation20_spill]] %s1867_s29  ;;  %p2711_p1 = scmp.eq.s32.totalorder %s1887_s10, 0 }
  0x19   : > { %2740 = sst [smem:[#allocation21_spill]] %s1871_s30  ;;  %s2016_s13 = sshll.u32 %s1879_s8, 1 }
  0x1a   : > { %2741 = sst [smem:[#allocation22_spill]] %s1875_s7  ;;  %s83_s14 = sadd.s32 1, %s1855_s26 }
  0x1b   : > { %2742 = sst [smem:[#allocation23_spill]] %s1879_s8  ;;  %s2821_s11 = smov (%p36_p0, %s35_s11), 0 }
  0x1c   : > { %2743 = sst [smem:[#allocation24_spill]] %s1883_s9  ;;  %s2823_s12 = smov (!%p36_p0, %s38_s12), %s1883_s9 }
  0x1d   : > { %2744 = sst [smem:[#allocation25_spill]] %s2016_s13  ;;  %s43_s15 = ssub.s32 %s1879_s8, %s2821_s11 }
  0x1e   : > { %2745 = sst [smem:[#allocation26_spill]] %s2821_s11  ;;  %s1257_s16 = sadd.s32 4294967295, %s2016_s13 }
  0x1f   : > { %p40_p2 = scmp.ge.s32.totalorder %s2823_s12, 2  ;;  %p72_p3 = scmp.gt.s32.totalorder %s1257_s16, 0 }
  0x20   : > { %s1258_s17 = sshll.u32 %s2821_s11, 1  ;;  %p90_p4 = scmp.ne.s32.totalorder %s1855_s26, %s1851_s25 }
  0x21   : > { %s2825_s12 = smov (%p40_p2, %s2823_s12), 0  ;;  %s2827_s16 = smov (!%p72_p3, %s1257_s16), 0 }
  0x22   : > { %2746 = sst [smem:[#allocation27_spill]] %s2825_s12  ;;  %s2032_s18 = ssub.s32 %s1883_s9, %s2825_s12 }
  0x23   : > { %s1259_s19 = sadd.s32 4294967295, %s1258_s17  ;;  %s2035_s20 = sor.u32 %s43_s15, %s2032_s18 }
  0x24   : > { %p76_p5 = scmp.gt.s32.totalorder %s1259_s19, 0  ;;  %p2040_p7 = por %p90_p4, %p2711_p1 }
  0x25   : > { %p96_p8 = scmp.ne.s32.totalorder %s1851_s25, %s1847_s24  ;;  %s2046_s8 = sadd.s32 2, %s1258_s17 }
  0x26   : > { %s2829_s19 = smov (!%p76_p5, %s1259_s19), 0  ;;  %p2710_p11 = scmp.lt.s32.totalorder %s1887_s10, 8 }
  0x27   : > { %s79_s12 = ssub.s32 %s2827_s16, %s2829_s19  ;;  %s2052_s15 = sshll.u32 %s1883_s9, 5 }
  0x28   : > { %s80_s6 = sor.u32 %s79_s12, %s2032_s18  ;;  %s289_s3 = sand.u32 1, %s1887_s10  }
  0x29   : > { %p81_p10 = scmp.eq.s32.totalorder %s80_s6, 0  ;;  %s291_s5 = sand.u32 1, %s1855_s26  }
  0x2a   : > { %s1269_s30 = sshll.u32 %s291_s5, 5  ;;  %s302_s2 = sadd.s32 %s2052_s15, %s2827_s16 }
  0x2b   : > { %s2055_s7 = scalar_select %p81_p10, %s1855_s26, %s83_s14  }
  0x2c   : > { %s1273_s23 = sshll.u32 %s302_s2, 7  ;;  %s293_s17 = scalar_lea.vmem [#allocation6], %s1269_s30 }
  0x2d   : > { %2748 = sst [smem:[#allocation28_spill]] %s2055_s7  ;;  %s305_s0 = sshll.u32 %s293_s17, 4  ;;  %s2065_s0 = int_to_ptr.vmem [resolvable:$true] %s305_s0 }
  0x2e   : > { %s2749_s1 = sld [smem:[#allocation31_spill]]  ;;  %p2071_p12 = pnand %p2710_p11, %p2040_p7 }
  0x2f   : > { %s2075_s2 = scalar_lea.sflag [#allocation7], %s289_s3 }
  0x30   : > { %p1613_p0 = pneg %p2071_p12 }
  0x34   : > { %s2063_s27 = scalar_lea.hbm %s2749_s1, %s1273_s23  ;;  %s1616_s11 = scalar_lea.hbm %s2749_s1, 8192 }
  0x35   : > { %s1611_s5 = scalar_lea.hbm %s2063_s27, 512  ;;  %p1617_p4 = scmp.lt.u32.totalorder %s2063_s27, %s2749_s1 }
  0x36   : > { %p1612_p13 = scmp.ne.s32.totalorder %s2063_s27, %s1611_s5  ;;  %p1618_p5 = scmp.lt.u32.totalorder %s1616_s11, %s1611_s5 }
  0x37   : > { %p1620_p10 = scmp.lt.u32.totalorder %s1611_s5, %s2063_s27 }
  0x38   : > { %p1614_p2 = pnand %p1613_p0, %p1612_p13  ;;  %p1619_p7 = por %p1618_p5, %p1617_p4 }
  0x3a   : > { %p1615_p3 = pneg %p1614_p2  ;;  %p1621_p9 = por %p1620_p10, %p1619_p7 }
  0x3c   : > { %p1622_p11 = pnand %p1621_p9, %p1615_p3 }
  0x3e   : > { %1625 = shalt.err (!%p1622_p11)
}
  0x3f   : > { %s1626_s3 = scalar_lea.vmem %s2065_s0, 512  ;;  %s1889_s14 = smov [#allocation6]  }
  0x40   : > { %p1627_p13 = scmp.ne.s32.totalorder %s2065_s0, %s1626_s3  ;;  %s1631_s16 = sshll.u32 %s1889_s14, 4  ;;  %s1632_s16 = int_to_ptr.vmem [resolvable:$false] %s1631_s16 }
  0x41   : > { %s1633_s17 = scalar_lea.vmem %s1632_s16, 1024  ;;  %p1634_p6 = scmp.lt.s32.totalorder %s2065_s0, %s1632_s16 }
  0x42   : > { %p1629_p2 = pnand %p1627_p13, %p1613_p0  ;;  %p1635_p4 = scmp.lt.s32.totalorder %s1633_s17, %s1626_s3 }
  0x44   : > { %p1630_p1 = pneg %p1629_p2  ;;  %p1636_p5 = por %p1635_p4, %p1634_p6 }
  0x46   : > { %p1637_p7 = pnand %p1636_p5, %p1630_p1 }
  0x48   : > { %1640 = shalt.err (!%p1637_p7)
}
  0x49   : > { %s2718_s19 = smov 1024   ;;  %s2712_s5 = smov 128  }
  0x4a   : > { %s2717_s23 = smov 8   ;;  %s2107_s30 = sadd.s32 4294967295, %s1887_s10  }
  0x4b   : > { %1423 = dma.hbm_to_vmem [thread:$0]  (!%p2071_p12), %s2063_s27, 512, %s2065_s0, %s2075_s2, %s2718_s19, %s2712_s5, %s2717_s23  }
  0x4c   : > { %p132_p1 = scmp.ne.s32.totalorder %s1839_s22, %s1835_s21  ;;  %p2713_p6 = scmp.eq.s32.totalorder %s2107_s30, 0 }
  0x4d   : > { %p1262_p11 = scmp.ge.s32.totalorder %s1887_s10, 1  ;;  %p234_p0 = scmp.lt.s32.totalorder %s1887_s10, 9 }
  0x4e   : > { %p2120_p3 = por %p96_p8, %p2713_p6  ;;  %p2126_p12 = por %p132_p1, %p2713_p6 }
  0x4f   : > { %p2130_p10 = pnand %p1262_p11, %p234_p0  ;;  %s1893_s21 = smov [#allocation9]  }
  0x50   : > { %s2751_s6 = scalar_select %p2120_p3, 1, 0 }
  0x51   : > { %s2752_s0 = scalar_select %p2126_p12, 1, 0 }
  0x52   : > { %s2753_s27 = scalar_select %p2130_p10, 1, 0 }
  0x53   : > { %p1413_p13 = pneg %p2130_p10  ;;  %s249_s11 = sshll.u32 %s1893_s21, 4  ;;  %s250_s11 = int_to_ptr.vmem [resolvable:$true] %s249_s11 }
  0x54   : > { %s2755_s4 = sld [smem:[#allocation34_spill]] }
  0x55   : > { %p2138_p8 = pnand %p1413_p13, %p2713_p6 }
  0x57   : > { %p1643_p4 = pneg %p2138_p8 }
  0x5a   : > { %s1641_s3 = scalar_lea.hbm %s2755_s4, 3072 }
  0x5b   : > { %p1642_p2 = scmp.ne.s32.totalorder %s2755_s4, %s1641_s3  ;;  %p1648_p1 = scmp.lt.u32.totalorder %s1641_s3, %s2755_s4 }
  0x5d   : > { %p1644_p5 = pnand %p1643_p4, %p1642_p2 }
  0x5f   : > { %p1645_p7 = pneg %p1644_p5 }
  0x61   : > { %p1650_p11 = pnand %p1648_p1, %p1645_p7 }
  0x63   : > { %1653 = shalt.err (!%p1650_p11)
}
  0x64   : > { %s1654_s5 = scalar_lea.vmem %s250_s11, 3072  ;;  %p1662_p6 = scmp.lt.s32.totalorder %s250_s11, %s250_s11 }
  0x65   : > { %p1655_p0 = scmp.ne.s32.totalorder %s250_s11, %s1654_s5  ;;  %p1663_p12 = scmp.lt.s32.totalorder %s1654_s5, %s1654_s5 }
  0x67   : > { %p1657_p13 = pnand %p1655_p0, %p1643_p4  ;;  %p1664_p3 = por %p1663_p12, %p1662_p6 }
  0x69   : > { %p1658_p9 = pneg %p1657_p13 }
  0x6b   : > { %p1665_p10 = pnand %p1664_p3, %p1658_p9 }
  0x6d   : > { %1668 = shalt.err (!%p1665_p10)
}
  0x6e   : > { %s2720_s12 = smov 256   ;;  %s2756_s13 = sld [smem:[#allocation19_spill]] }
  0x6f   : > { %s2757_s3 = sld [smem:[#allocation25_spill]]  ;;  %s2721_s5 = smov 16  }
  0x70   : > { %1416 = dma.hbm_to_vmem [thread:$0]  (!%p2138_p8), %s2755_s4, 3072, %s250_s11, [#allocation10], %s2720_s12, %s2720_s12, %s2721_s5  }
  0x71   : > { %s1255_s17 = sadd.s32 4294967294, %s1887_s10   ;;  %s47_s21 = sadd.s32 1, %s1867_s29 }
  0x72   : > { %p2758_p6 = scmp.eq.s32.totalorder %s2035_s20, 0  ;;  %p54_p9 = scmp.ne.s32.totalorder %s1867_s29, %s1863_s28 }
  0x73   : > { %p227_p12 = scmp.eq.s32.totalorder %s1255_s17, 7  ;;  %s266_s19 = sand.u32 1, %s1867_s29  }
  0x74   : > { %s2166_s23 = scalar_select %p2758_p6, %s1867_s29, %s47_s21  }
  0x75   : > { %p60_p3 = scmp.ne.s32.totalorder %s1863_s28, %s2756_s13  ;;  %p2760_p10 = scmp.eq.s32.totalorder %s1887_s10, 0 }
  0x76   : > { %2759 = sst [smem:[#allocation29_spill]] %s2166_s23  ;;  %p2761_p4 = scmp.eq.s32.totalorder %s2107_s30, 0 }
  0x77   : > { %p56_p2 = por %p2760_p10, %p54_p9  ;;  %p2763_p8 = scmp.eq.s32.totalorder %s2107_s30, 7 }
  0x78   : > { %p2177_p5 = por %p2761_p4, %p60_p3  ;;  %p2187_p1 = por %p227_p12, %p60_p3 }
  0x79   : > { %p2183_p7 = por %p2763_p8, %p54_p9  ;;  %s1265_s13 = sshll.u32 %s266_s19, 6 }
  0x7a   : > { %s2762_s24 = scalar_select %p2177_p5, 1, 0 }
  0x7b   : > { %s2764_s11 = scalar_select %p2183_p7, 1, 0 }
  0x7c   : > { %s2765_s20 = scalar_select %p2187_p1, 1, 0 }
  0x7d   : > { %s276_s14 = sadd.s32 %s2052_s15, %s2757_s3  ;;  %s270_s17 = scalar_lea.vmem [#allocation3], %s1265_s13 }
  0x7e   : > { %2766 = sst [smem:[#allocation25_spill]] %s2765_s20  ;;  %s1268_s16 = sshll.u32 %s276_s14, 7 }
  0x7f   : > { %s279_s21 = sshll.u32 %s270_s17, 4  ;;  %s2767_s1 = sld [smem:[#allocation30_spill]]  ;;  %s2198_s21 = int_to_ptr.vmem [resolvable:$true] %s279_s21 }
  0x80   : > { %p2768_p11 = scmp.lt.s32.totalorder %s1887_s10, 8  ;;  %s107_s13 = sadd.s32 2, %s2757_s3 }
  0x81   : > { %p2209_p13 = scmp.lt.s32.totalorder %s107_s13, 7  ;;  %s2213_s12 = scalar_lea.sflag [#allocation4], %s266_s19 }
  0x82   : > { %p2202_p0 = pnand %p2768_p11, %p56_p2 }
  0x84   : > { %p1671_p9 = pneg %p2202_p0 }
  0x85   : > { %s2196_s4 = scalar_lea.hbm %s2767_s1, %s1268_s16  ;;  %s1674_s23 = scalar_lea.hbm %s2767_s1, 8192 }
  0x86   : > { %s1669_s5 = scalar_lea.hbm %s2196_s4, 1024  ;;  %p1675_p10 = scmp.lt.u32.totalorder %s2196_s4, %s2767_s1 }
  0x87   : > { %p1670_p6 = scmp.ne.s32.totalorder %s2196_s4, %s1669_s5  ;;  %p1676_p2 = scmp.lt.u32.totalorder %s1674_s23, %s1669_s5 }
  0x88   : > { %p1678_p8 = scmp.lt.u32.totalorder %s1669_s5, %s2196_s4 }
  0x89   : > { %p1672_p3 = pnand %p1671_p9, %p1670_p6  ;;  %p1677_p4 = por %p1676_p2, %p1675_p10 }
  0x8b   : > { %p1673_p12 = pneg %p1672_p3  ;;  %p1679_p11 = por %p1678_p8, %p1677_p4 }
  0x8d   : > { %p1680_p1 = pnand %p1679_p11, %p1673_p12 }
  0x8f   : > { %1683 = shalt.err (!%p1680_p1)
}
  0x90   : > { %s1684_s19 = scalar_lea.vmem %s2198_s21, 1024  ;;  %s1896_s16 = smov [#allocation3]  }
  0x91   : > { %p1685_p6 = scmp.ne.s32.totalorder %s2198_s21, %s1684_s19  ;;  %s1689_s17 = sshll.u32 %s1896_s16, 4  ;;  %s1690_s17 = int_to_ptr.vmem [resolvable:$false] %s1689_s17 }
  0x92   : > { %s1691_s29 = scalar_lea.vmem %s1690_s17, 2048  ;;  %p1692_p5 = scmp.lt.s32.totalorder %s2198_s21, %s1690_s17 }
  0x93   : > { %p1687_p3 = pnand %p1685_p6, %p1671_p9  ;;  %p1693_p10 = scmp.lt.s32.totalorder %s1691_s29, %s1684_s19 }
  0x95   : > { %p1688_p7 = pneg %p1687_p3  ;;  %p1694_p2 = por %p1693_p10, %p1692_p5 }
  0x97   : > { %p1695_p4 = pnand %p1694_p2, %p1688_p7 }
  0x99   : > { %1698 = shalt.err (!%p1695_p4)
}
  0x9a   : > { %s2771_s7 = smov 16   ;;  %s2772_s23 = smov 256  }
  0x9b   : > { %s2773_s5 = smov 1024   ;;  %s2774_s16 = sld [smem:[#allocation17_spill]] }
  0x9c   : > { %1420 = dma.hbm_to_vmem [thread:$0]  (!%p2202_p0), %s2196_s4, 1024, %s2198_s21, %s2213_s12, %s2773_s5, %s2772_s23, %s2771_s7  }
  0x9d   : > { %s2831_s13 = smov (!%p2209_p13, %s107_s13), 7  ;;  %p2775_p5 = scmp.lt.s32.totalorder %s2046_s8, 7 }
  0x9e   : > { %p2776_p1 = scmp.eq.s32.totalorder %s1887_s10, 0  ;;  %s328_s26 = sadd.s32 %s2052_s15, %s2831_s13 }
  0x9f   : > { %s2833_s8 = smov (!%p2775_p5, %s2046_s8), 7  ;;  %s1277_s20 = sshll.u32 %s328_s26, 7 }
  0xa0   : > { %s115_s19 = ssub.s32 %s2831_s13, %s2833_s8  ;;  %s2777_s12 = sld [smem:[#allocation32_spill]] }
  0xa1   : > { %s119_s9 = sadd.s32 1, %s2774_s16  ;;  %p126_p7 = scmp.ne.s32.totalorder %s2774_s16, %s1839_s22 }
  0xa2   : > { %s317_s17 = sand.u32 1, %s2774_s16   ;;  %s116_s29 = sor.u32 %s115_s19, %s2032_s18 }
  0xa3   : > { %p128_p9 = por %p126_p7, %p2776_p1  ;;  %p117_p12 = scmp.eq.s32.totalorder %s116_s29, 0 }
  0xa4   : > { %s1274_s1 = sshll.u32 %s317_s17, 5  ;;  %p2778_p0 = scmp.lt.s32.totalorder %s1887_s10, 8 }
  0xa5   : > { %s2835_s16 = smov (!%p117_p12, %s2774_s16), %s119_s9  ;;  %s319_s4 = scalar_lea.vmem [#allocation8], %s1274_s1 }
  0xa6   : > { %s331_s3 = sshll.u32 %s319_s4, 4  ;;  %s2265_s7 = scalar_lea.hbm %s2777_s12, %s1277_s20  ;;  %s2267_s3 = int_to_ptr.vmem [resolvable:$true] %s331_s3 }
  0xa7   : > { %p2271_p13 = pnand %p2778_p0, %p128_p9  ;;  %s1699_s1 = scalar_lea.hbm %s2265_s7, 512 }
  0xa8   : > { %p1700_p8 = scmp.ne.s32.totalorder %s2265_s7, %s1699_s1  ;;  %s1704_s15 = scalar_lea.hbm %s2777_s12, 8192 }
  0xa9   : > { %p1701_p11 = pneg %p2271_p13  ;;  %p1705_p10 = scmp.lt.u32.totalorder %s2265_s7, %s2777_s12 }
  0xaa   : > { %p1706_p2 = scmp.lt.u32.totalorder %s1704_s15, %s1699_s1  ;;  %p1708_p5 = scmp.lt.u32.totalorder %s1699_s1, %s2265_s7 }
  0xab   : > { %p1702_p6 = pnand %p1701_p11, %p1700_p8 }
  0xac   : > { %p1707_p4 = por %p1706_p2, %p1705_p10 }
  0xad   : > { %p1703_p3 = pneg %p1702_p6 }
  0xae   : > { %p1709_p7 = por %p1708_p5, %p1707_p4 }
  0xb0   : > { %p1710_p1 = pnand %p1709_p7, %p1703_p3 }
  0xb2   : > { %1713 = shalt.err (!%p1710_p1)
}
  0xb3   : > { %s1714_s23 = scalar_lea.vmem %s2267_s3, 512  ;;  %s1897_s9 = smov [#allocation8]  }
  0xb4   : > { %p1715_p9 = scmp.ne.s32.totalorder %s2267_s3, %s1714_s23  ;;  %s1719_s19 = sshll.u32 %s1897_s9, 4  ;;  %s1720_s19 = int_to_ptr.vmem [resolvable:$false] %s1719_s19 }
  0xb5   : > { %s1721_s17 = scalar_lea.vmem %s1720_s19, 1024  ;;  %p1722_p8 = scmp.lt.s32.totalorder %s2267_s3, %s1720_s19 }
  0xb6   : > { %p1717_p12 = pnand %p1715_p9, %p1701_p11  ;;  %p1723_p6 = scmp.lt.s32.totalorder %s1721_s17, %s1714_s23 }
  0xb8   : > { %p1718_p0 = pneg %p1717_p12  ;;  %p1724_p10 = por %p1723_p6, %p1722_p8 }
  0xba   : > { %p1725_p2 = pnand %p1724_p10, %p1718_p0 }
  0xbc   : > { %1728 = shalt.err (!%p1725_p2)
}
  0xbd   : > { %s2780_s29 = smov 8   ;;  %s2781_s4 = smov 128  }
  0xbe   : > { %1426 = dma.hbm_to_vmem [thread:$0]  (!%p2271_p13), %s2265_s7, 512, %s2267_s3, %s2075_s2, %s2773_s5, %s2781_s4, %s2780_s29  }
  0xbf   : > { %p2782_p11 = scmp.ne.s32.totalorder %s2753_s27, 0 }
  0xc0   : > { %s2307_s21 = sand.u32 (!%p2782_p11), 1, %s1863_s28   ;;  %p2783_p3 = scmp.ne.s32.totalorder (!%p2782_p11), %s2762_s24, 0 }
  0xc1   : > { %343 = sbr.rel (%p2782_p11) target bundleno = 673 (0x2a1), region = 44  ;;  %s1279_s14 = sshll.u32 (!%p2782_p11), %s2307_s21, 6 }
  0xc2   : > { %s346_s1 = scalar_lea.sflag (!%p2782_p11), [#allocation4], %s2307_s21  ;;  %s2313_s8 = scalar_lea.vmem (!%p2782_p11), [#allocation3], %s1279_s14 }
  0xc8   : > { %1814 = dma.done.wait (%p2783_p3), %s346_s1, 1024  }
  0xc9   : > { %1816 = vsyncadd (%p2783_p3), %s346_s1, 4294966272  ;;  %s354_s2 = sand.u32 1, %s2107_s30   ;;  %s356_s27 = sand.u32 1, %s1851_s25  }
  0xca   : > { %s1280_s5 = sshll.u32 %s356_s27, 5  ;;  %s355_s3 = scalar_lea.sflag [#allocation7], %s354_s2 }
  0xcb   : > { %s2321_s7 = scalar_lea.vmem [#allocation6], %s1280_s5  ;;  %p2784_p13 = scmp.ne.s32.totalorder %s2751_s6, 0 }
  0xcd   : > { %1818 = dma.done.wait (%p2784_p13), %s355_s3, 512  }
  0xce   : > { %1820 = vsyncadd (%p2784_p13), %s355_s3, 4294966784  ;;  %s365_s26 = sand.u32 1, %s1839_s22   ;;  %p2785_p4 = scmp.ne.s32.totalorder %s2752_s0, 0 }
  0xcf   : > { %s1281_s18 = sshll.u32 %s365_s26, 5 }
  0xd0   : > { %s2328_s24 = scalar_lea.vmem [#allocation8], %s1281_s18 }
  0xd1   : > { %1822 = dma.done.wait (%p2785_p4), %s355_s3, 512  }
  0xd2   : > { %1824 = vsyncadd (%p2785_p4), %s355_s3, 4294966784  ;;  %p2786_p5 = scmp.eq.s32.totalorder %s2107_s30, 0 }
  0xd4   : > { %1826 = dma.done.wait (%p2786_p5), [#allocation10], 3072   ;;  %p2787_p7 = pmov %p2786_p5 }
  0xd5   : > { %s2788_s15 = sld [smem:[#allocation21_spill]]  ;;  %v2340_v0 = vld [vmem:[%s2313_s8 + $0x8] sm:$0xff]  ;;  %v2343_v1 = vld [vmem:[%s2313_s8] sm:$0xff]  ;;  %v2346_v2 = vld [vmem:[%s2313_s8 + $0x18] sm:$0xff]  ;;  %s1898_s30 = smov 8   ;;  %vm845_vm4 = vcmask 785408   ;;  %v459_v43 = vlaneseq }
  0xd6   : > { %1828 = vsyncadd (%p2787_p7), [#allocation10], 4294964224  ;;  %451 = vrot.lane.b32.xlu1 %v2340_v0, %s1898_s30  ;;  %443 = vrot.lane.b32.xlu0 %v2343_v1, %s1898_s30  ;;  %v2354_v3 = vld [vmem:[%s2313_s8 + $0x10] sm:$0xff]  ;;  %v1313_v4 = vpack.c.bf16 %v2346_v2, %v2340_v0  ;;  %v2359_v5 = vld [vmem:[%s2313_s8 + $0x38] sm:$0xff]  ;;  %s1899_s20 = smov 120   ;;  %s1900_s13 = smov 1  }
  0xd7   : > { %v2362_v6 = vld [vmem:[%s2313_s8 + $0x28] sm:$0xff]  ;;  %v1315_v7 = vpack.c.bf16 %v2354_v3, %v2343_v1  ;;  %v2367_v8 = vld [vmem:[%s2313_s8 + $0x30] sm:$0xff]  ;;  %v2370_v9 = vld [vmem:[%s2313_s8 + $0x20] sm:$0xff]  ;;  %s1901_s23 = smov 127   ;;  %s2793_s17 = sld [smem:[#allocation35_spill]]  ;;  %v1902_v32 = vmov 0  }
  0xd8   : > { %1314 = vmatprep.subr.bf16.mxu0 %v1313_v4  ;;  %1373 = vmatprep.subr.bf16.mxu1 %v1313_v4  ;;  %v1317_v10 = vpack.c.bf16 %v2359_v5, %v2362_v6  ;;  %v1319_v12 = vpack.c.bf16 %v2367_v8, %v2370_v9  ;;  %v654_v13 = vld [vmem:[%s2321_s7] sm:$0xff]  ;;  %v655_v14 = vld [vmem:[%s2321_s7 + $0x8] sm:$0xff]  ;;  %v656_v18 = vld [vmem:[%s2321_s7 + $0x10] sm:$0xff]  ;;  %v472_v44 = vshrl.u32 %v459_v43, 7  ;;  %v2484_v45 = vand.u32 127, %v459_v43  ;;  %s2794_s2 = sld [smem:[#allocation33_spill]] }
  0xd9   : > { %1316 = vmatpush1.bf16.msra.mxu0 %v1315_v7  ;;  %1387 = vmatpush1.bf16.msra.mxu1 %v1315_v7  ;;  %v1323_v15 = vpack.c.bf16 %v655_v14, %v654_v13  ;;  %v657_v19 = vld [vmem:[%s2321_s7 + $0x18] sm:$0xff]  ;;  %v666_v20 = vld [vmem:[%s2328_s24] sm:$0xff]  ;;  %v667_v21 = vld [vmem:[%s2328_s24 + $0x8] sm:$0xff]  ;;  %s2796_s9 = sld [smem:[#allocation36_spill]]  ;;  %s1092_s4 = scalar_lea.sflag [#allocation5], %s2307_s21 }
  0xda   : > { %453 = vrot.lane.b32.xlu1 %v2346_v2, %s1898_s30  ;;  %445 = vrot.lane.b32.xlu0 %v2354_v3, %s1898_s30  ;;  %v1328_v22 = vpack.c.bf16 %v657_v19, %v656_v18  ;;  %v1331_v23 = vpack.c.bf16 %v667_v21, %v666_v20  ;;  %v668_v25 = vld [vmem:[%s2328_s24 + $0x10] sm:$0xff]  ;;  %v669_v26 = vld [vmem:[%s2328_s24 + $0x18] sm:$0xff]  ;;  %v694_v28 = vld [vmem:[#allocation9 + $0x8] sm:$0xff]  ;;  %v2486_v46 = vsub.s32 0, %v472_v44  ;;  %v2488_v47 = vsub.s32 1, %v472_v44  ;;  %s2795_s24 = sld [smem:[#allocation22_spill]] }
  0xdb   : > { %p653_p1 = scmp.gt.s32.totalorder %s2788_s15, 0  ;;  %p665_p9 = scmp.lt.s32.totalorder %s2788_s15, 3  ;;  %1318 = vmatprep.subr.bf16.mxu0 %v1317_v10  ;;  %1374 = vmatprep.subr.bf16.mxu1 %v1317_v10  ;;  %v1336_v27 = vpack.c.bf16 %v669_v26, %v668_v25  ;;  %v706_v29 = vld [vmem:[#allocation9 + $0x68] sm:$0xff]  ;;  %vm461_vm5 = vcmp.lt.s32.totalorder %v2484_v45, 8  ;;  %vm513_vm6 = vcmp.lt.s32.totalorder %v2484_v45, 120  ;;  %vm565_vm7 = vcmp.lt.s32.totalorder %v2484_v45, 1 }
  0xdc   : > { %1287 = vmatprep.mubr.msk.f32.mxu0 %vm845_vm4, %v694_v28  ;;  %1293 = vmatprep.mubr.msk.f32.mxu1 %vm845_vm4, %v706_v29  ;;  %vm617_vm8 = vcmp.lt.s32.totalorder %v2484_v45, 127  ;;  %v695_v45 = vld [vmem:[#allocation9 + $0x10] sm:$0xff]  ;;  %p2798_p0 = scmp.ne.s32.totalorder %s2764_s11, 0  ;;  %s1903_s8 = smov [#allocation11]  }
  0xdd   : > { %s658_s6 = scalar_select %p653_p1, 1, 0  ;;  %1320 = vmatpush1.bf16.msra.mxu0 %v1319_v12  ;;  %1388 = vmatpush1.bf16.msra.mxu1 %v1319_v12  ;;  %v774_v30 = vld [vmem:[%s2793_s17 + $0x8] sm:$0xff]  ;;  %v773_v31 = vld [vmem:[%s2793_s17] sm:$0xff]  ;;  %v775_v33 = vld [vmem:[%s2793_s17 + $0x10] sm:$0xff] }
  0xde   : > { %s670_s0 = scalar_select %p665_p9, 1, 0  ;;  %449 = vrot.lane.b32.xlu1 %v2367_v8, %s1898_s30  ;;  %447 = vrot.lane.b32.xlu0 %v2370_v9, %s1898_s30  ;;  %v776_v34 = vld [vmem:[%s2793_s17 + $0x18] sm:$0xff]  ;;  %v777_v35 = vld [vmem:[%s2793_s17 + $0x20] sm:$0xff] }
  0xdf   : > { %v659_v11 = vstv %s658_s6  ;;  %1322 = vmatprep.subr.bf16.mxu0 %v1315_v7  ;;  %1375 = vmatprep.subr.bf16.mxu1 %v1315_v7  ;;  %v778_v36 = vld [vmem:[%s2793_s17 + $0x28] sm:$0xff]  ;;  %v779_v37 = vld [vmem:[%s2793_s17 + $0x30] sm:$0xff]  ;;  %v780_v38 = vld [vmem:[%s2793_s17 + $0x38] sm:$0xff]  ;;  %s1300_s6 = sshll.u32 %s2788_s15, 1  ;;  %s409_s15 = scalar_lea.vmem [#allocation11], %s1279_s14 }
  0xe0   : > { %vm660_vm0 = vcmp.eq.s32.totalorder %v659_v11, 1  ;;  %v671_v16 = vstv %s670_s0  ;;  %1562 = vset.pattern.permute.xlu1 %v1902_v32  ;;  %1561 = vset.pattern.permute.xlu0 %v1902_v32  ;;  %v781_v39 = vld [vmem:[%s2793_s17 + $0x40] sm:$0xff]  ;;  %v782_v40 = vld [vmem:[%s2793_s17 + $0x48] sm:$0xff]  ;;  %v783_v41 = vld [vmem:[%s2793_s17 + $0x50] sm:$0xff]  ;;  %s2797_s19 = smov %s2796_s9  ;;  %s1733_s27 = sshll.u32 %s1903_s8, 4  ;;  %s1734_s27 = int_to_ptr.vmem [resolvable:$false] %s1733_s27 }
  0xe1   : > { %vm2388_vm1 = vmpackc.low %vm660_vm0, %vm660_vm0  ;;  %vm672_vm2 = vcmp.eq.s32.totalorder %v671_v16, 1  ;;  %v784_v42 = vld [vmem:[%s2793_s17 + $0x58] sm:$0xff]  ;;  %v1285_v48 = vld [vmem:[%s2794_s2 + $0x2] ss:$4 sm:$0x3]  ;;  %s1735_s5 = scalar_lea.vmem %s1734_s27, 2048 }
  0xe2   : > { %1325 = vmatpush1.bf16.msk.msra.mxu0 %vm2388_vm1, %v1323_v15  ;;  %1389 = vmatpush1.bf16.msk.msra.mxu1 %vm2388_vm1, %v1323_v15  ;;  %vm2404_vm3 = vmpackc.low %vm672_vm2, %vm672_vm2  ;;  %v474_v51 = vrot.slane %v1285_v48, %v2486_v46  ;;  %v478_v52 = vrot.slane %v1285_v48, %v2488_v47  ;;  %v1286_v21 = vld [vmem:[%s2794_s2 + $0x3] ss:$4 sm:$0x3] }
  0xe3   : > { %457 = vrot.lane.b32.xlu1 %v2359_v5, %s1898_s30  ;;  %455 = vrot.lane.b32.xlu0 %v2362_v6, %s1898_s30  ;;  %v526_v26 = vrot.slane %v1286_v21, %v2486_v46  ;;  %s1301_s30 = sshll.u32 %s2795_s24, 5 }
  0xe4   : > { %1327 = vmatprep.subr.bf16.mxu0 %v1319_v12  ;;  %1376 = vmatprep.subr.bf16.mxu1 %v1319_v12  ;;  %s1104_s0 = sadd.s32 %s1301_s30, %s1300_s6 }
  0xe6   : > { %1330 = vmatpush1.bf16.msk.msra.mxu0 %vm2388_vm1, %v1328_v22  ;;  %1390 = vmatpush1.bf16.msk.msra.mxu1 %vm2388_vm1, %v1328_v22 }
  0xe7   : > { %499 = vrot.lane.b32.xlu1 %v2354_v3, %s1899_s20  ;;  %497 = vrot.lane.b32.xlu0 %v2343_v1, %s1899_s20 }
  0xe8   : > { %1333 = vmatprep.subr.msk.bf16.mxu0 %vm2404_vm3, %v1331_v23  ;;  %1377 = vmatprep.subr.msk.bf16.mxu1 %vm2404_vm3, %v1331_v23 }
  0xea   : > { %1335 = vmatpush1.bf16.msra.mxu0 %v1313_v4  ;;  %1391 = vmatpush1.bf16.msra.mxu1 %v1313_v4 }
  0xeb   : > { %507 = vrot.lane.b32.xlu1 %v2346_v2, %s1899_s20  ;;  %505 = vrot.lane.b32.xlu0 %v2340_v0, %s1899_s20 }
  0xec   : > { %1338 = vmatprep.subr.msk.bf16.mxu0 %vm2404_vm3, %v1336_v27  ;;  %1378 = vmatprep.subr.msk.bf16.mxu1 %vm2404_vm3, %v1336_v27  ;;  %v530_v27 = vrot.slane %v1286_v21, %v2488_v47 }
  0xee   : > { %1340 = vmatpush1.bf16.msra.mxu0 %v1317_v10  ;;  %1392 = vmatpush1.bf16.msra.mxu1 %v1317_v10 }
  0xef   : > { %503 = vrot.lane.b32.xlu1 %v2367_v8, %s1899_s20  ;;  %501 = vrot.lane.b32.xlu0 %v2370_v9, %s1899_s20 }
  0xf3   : > { %511 = vrot.lane.b32.xlu1 %v2359_v5, %s1899_s20  ;;  %509 = vrot.lane.b32.xlu0 %v2362_v6, %s1899_s20  ;;  %s1302_s20 = sshll.u32 %s1104_s0, 7 }
  0xf4   : > { %s2609_s29 = scalar_lea.hbm %s2796_s9, %s1302_s20 }
  0xf7   : > { %551 = vrot.lane.b32.xlu1 %v2354_v3, %s1900_s13  ;;  %549 = vrot.lane.b32.xlu0 %v2343_v1, %s1900_s13 }
  0xfb   : > { %559 = vrot.lane.b32.xlu1 %v2346_v2, %s1900_s13  ;;  %557 = vrot.lane.b32.xlu0 %v2340_v0, %s1900_s13 }
  0xff   : > { %555 = vrot.lane.b32.xlu1 %v2367_v8, %s1900_s13  ;;  %553 = vrot.lane.b32.xlu0 %v2370_v9, %s1900_s13 }
 0x103   : > { %563 = vrot.lane.b32.xlu1 %v2359_v5, %s1900_s13  ;;  %561 = vrot.lane.b32.xlu0 %v2362_v6, %s1900_s13  ;;  %s1107_s13 = sshll.u32 %s409_s15, 4  ;;  %s2612_s13 = int_to_ptr.vmem [resolvable:$true] %s1107_s13 }
 0x104   : > { %s1729_s1 = scalar_lea.vmem %s2612_s13, 1024  ;;  %p1736_p10 = scmp.lt.s32.totalorder %s2612_s13, %s1734_s27 }
 0x105   : > { %p1730_p12 = scmp.ne.s32.totalorder %s2612_s13, %s1729_s1  ;;  %p1737_p2 = scmp.lt.s32.totalorder %s1735_s5, %s1729_s1 }
 0x107   : > { %603 = vrot.lane.b32.xlu1 %v2354_v3, %s1901_s23  ;;  %601 = vrot.lane.b32.xlu0 %v2343_v1, %s1901_s23  ;;  %p1731_p8 = pnand %p1730_p12, %p2798_p0  ;;  %p1738_p11 = por %p1737_p2, %p1736_p10 }
 0x109   : > { %p1732_p6 = pneg %p1731_p8 }
 0x10b   : > { %611 = vrot.lane.b32.xlu1 %v2346_v2, %s1901_s23  ;;  %609 = vrot.lane.b32.xlu0 %v2340_v0, %s1901_s23  ;;  %p1739_p3 = pnand %p1738_p11, %p1732_p6 }
 0x10f   : > { %607 = vrot.lane.b32.xlu1 %v2367_v8, %s1901_s23  ;;  %605 = vrot.lane.b32.xlu0 %v2370_v9, %s1901_s23 }
 0x113   : > { %615 = vrot.lane.b32.xlu1 %v2359_v5, %s1901_s23  ;;  %613 = vrot.lane.b32.xlu0 %v2362_v6, %s1901_s23 }
 0x117   : > { %792 = vperm.xlu1 %1562, %v774_v30   ;;  %787 = vperm.xlu0 %1561, %v773_v31  }
 0x11b   : > { %797 = vperm.xlu1 %1562, %v775_v33   ;;  %802 = vperm.xlu0 %1561, %v776_v34  }
 0x11f   : > { %807 = vperm.xlu1 %1562, %v777_v35   ;;  %812 = vperm.xlu0 %1561, %v778_v36  }
 0x123   : > { %817 = vperm.xlu1 %1562, %v779_v37   ;;  %822 = vperm.xlu0 %1561, %v780_v38  }
 0x127   : > { %827 = vperm.xlu1 %1562, %v781_v39   ;;  %832 = vperm.xlu0 %1561, %v782_v40  }
 0x12b   : > { %837 = vperm.xlu1 %1562, %v783_v41   ;;  %842 = vperm.xlu0 %1561, %v784_v42  }
 0x148   : > { %v452_v49 = vpop.permute.xlu1 %451  ;;  %v444_v50 = vpop.permute.xlu0 %443 }
 0x149   : > { %v462_v53 = vsel %vm461_vm5, %v444_v50, %v452_v49  ;;  %v466_v54 = vsel %vm461_vm5, %v452_v49, %v444_v50 }
 0x14a   : > { %v481_v59 = vmul.f32 %v474_v51, %v466_v54  ;;  %v482_v60 = vmul.f32 %v478_v52, %v462_v53 }
 0x14c   : > { %v454_v55 = vpop.permute.xlu1 %453  ;;  %v446_v56 = vpop.permute.xlu0 %445 }
 0x14d   : > { %v463_v57 = vsel %vm461_vm5, %v446_v56, %v454_v55  ;;  %v467_v58 = vsel %vm461_vm5, %v454_v55, %v446_v56  ;;  %v428_v55 = vld [vmem:[%s2794_s2] ss:$4 sm:$0x3] }
 0x14e   : > { %v483_v61 = vmul.f32 %v474_v51, %v467_v58  ;;  %v484_v62 = vmul.f32 %v478_v52, %v463_v57 }
 0x150   : > { %v450_v63 = vpop.permute.xlu1 %449  ;;  %v448_v4 = vpop.permute.xlu0 %447  ;;  %v1341_v7 = vpack.c.bf16 %v484_v62, %v482_v60  ;;  %v1343_v10 = vpack.c.bf16 %v483_v61, %v481_v59  ;;  %v578_v60 = vrot.slane %v428_v55, %v2486_v46  ;;  %v582_v61 = vrot.slane %v428_v55, %v2488_v47 }
 0x152   : > { %1342 = vmatprep.subr.bf16.mxu0 %v1341_v7  ;;  %1379 = vmatprep.subr.bf16.mxu1 %v1341_v7 }
 0x153   : > { %1344 = vmatpush1.bf16.msra.mxu0 %v1343_v10  ;;  %1393 = vmatpush1.bf16.msra.mxu1 %v1343_v10 }
 0x155   : > { %v458_v11 = vpop.permute.xlu1 %457  ;;  %v456_v12 = vpop.permute.xlu0 %455 }
 0x156   : > { %v465_v13 = vsel %vm461_vm5, %v450_v63, %v458_v11  ;;  %v469_v14 = vsel %vm461_vm5, %v458_v11, %v450_v63  ;;  %v464_v15 = vsel %vm461_vm5, %v448_v4, %v456_v12  ;;  %v468_v16 = vsel %vm461_vm5, %v456_v12, %v448_v4 }
 0x157   : > { %v487_v17 = vmul.f32 %v474_v51, %v469_v14  ;;  %v488_v18 = vmul.f32 %v478_v52, %v465_v13  ;;  %v485_v19 = vmul.f32 %v474_v51, %v468_v16  ;;  %v486_v20 = vmul.f32 %v478_v52, %v464_v15 }
 0x159   : > { %v500_v22 = vpop.permute.xlu1 %499  ;;  %v498_v23 = vpop.permute.xlu0 %497  ;;  %v1345_v24 = vpack.c.bf16 %v488_v18, %v486_v20  ;;  %v1347_v25 = vpack.c.bf16 %v487_v17, %v485_v19 }
 0x15b   : > { %1346 = vmatprep.subr.bf16.mxu0 %v1345_v24  ;;  %1380 = vmatprep.subr.bf16.mxu1 %v1345_v24 }
 0x15c   : > { %1348 = vmatpush1.bf16.msra.mxu0 %v1347_v25  ;;  %1394 = vmatpush1.bf16.msra.mxu1 %v1347_v25 }
 0x15d   : > { %v508_v28 = vpop.permute.xlu1 %507  ;;  %v506_v29 = vpop.permute.xlu0 %505 }
 0x15e   : > { %v515_v30 = vsel %vm513_vm6, %v500_v22, %v508_v28  ;;  %v519_v31 = vsel %vm513_vm6, %v508_v28, %v500_v22  ;;  %v514_v32 = vsel %vm513_vm6, %v498_v23, %v506_v29  ;;  %v518_v33 = vsel %vm513_vm6, %v506_v29, %v498_v23 }
 0x15f   : > { %v535_v34 = vmul.f32 %v526_v26, %v515_v30  ;;  %v536_v35 = vmul.f32 %v530_v27, %v519_v31  ;;  %v533_v36 = vmul.f32 %v526_v26, %v514_v32  ;;  %v534_v37 = vmul.f32 %v530_v27, %v518_v33  ;;  %v1284_v30 = vld [vmem:[%s2794_s2 + $0x1] ss:$4 sm:$0x3] }
 0x161   : > { %v504_v38 = vpop.permute.xlu1 %503  ;;  %v502_v39 = vpop.permute.xlu0 %501  ;;  %v1349_v40 = vpack.c.bf16 %v536_v35, %v534_v37  ;;  %v1351_v41 = vpack.c.bf16 %v535_v34, %v533_v36  ;;  %v630_v35 = vrot.slane %v1284_v30, %v2486_v46  ;;  %v634_v36 = vrot.slane %v1284_v30, %v2488_v47 }
 0x163   : > { %1350 = vmatprep.subr.bf16.mxu0 %v1349_v40  ;;  %1381 = vmatprep.subr.bf16.mxu1 %v1349_v40 }
 0x164   : > { %1352 = vmatpush1.bf16.msra.mxu0 %v1351_v41  ;;  %1395 = vmatpush1.bf16.msra.mxu1 %v1351_v41 }
 0x165   : > { %v512_v42 = vpop.permute.xlu1 %511  ;;  %v510_v43 = vpop.permute.xlu0 %509 }
 0x166   : > { %v517_v44 = vsel %vm513_vm6, %v504_v38, %v512_v42  ;;  %v521_v48 = vsel %vm513_vm6, %v512_v42, %v504_v38  ;;  %v516_v49 = vsel %vm513_vm6, %v502_v39, %v510_v43  ;;  %v520_v50 = vsel %vm513_vm6, %v510_v43, %v502_v39 }
 0x167   : > { %v539_v51 = vmul.f32 %v526_v26, %v517_v44  ;;  %v540_v52 = vmul.f32 %v530_v27, %v521_v48  ;;  %v537_v53 = vmul.f32 %v526_v26, %v516_v49  ;;  %v538_v54 = vmul.f32 %v530_v27, %v520_v50 }
 0x169   : > { %v552_v56 = vpop.permute.xlu1 %551  ;;  %v550_v57 = vpop.permute.xlu0 %549  ;;  %v1353_v58 = vpack.c.bf16 %v540_v52, %v538_v54  ;;  %v1355_v59 = vpack.c.bf16 %v539_v51, %v537_v53 }
 0x16b   : > { %1354 = vmatprep.subr.bf16.mxu0 %v1353_v58  ;;  %1382 = vmatprep.subr.bf16.mxu1 %v1353_v58 }
 0x16c   : > { %1356 = vmatpush1.bf16.msra.mxu0 %v1355_v59  ;;  %1396 = vmatpush1.bf16.msra.mxu1 %v1355_v59 }
 0x16d   : > { %v560_v62 = vpop.permute.xlu1 %559  ;;  %v558_v63 = vpop.permute.xlu0 %557 }
 0x16e   : > { %v567_v4 = vsel %vm565_vm7, %v552_v56, %v560_v62  ;;  %v571_v7 = vsel %vm565_vm7, %v560_v62, %v552_v56  ;;  %v566_v10 = vsel %vm565_vm7, %v550_v57, %v558_v63  ;;  %v570_v11 = vsel %vm565_vm7, %v558_v63, %v550_v57 }
 0x16f   : > { %v587_v12 = vmul.f32 %v578_v60, %v571_v7  ;;  %v588_v13 = vmul.f32 %v582_v61, %v567_v4  ;;  %v585_v14 = vmul.f32 %v578_v60, %v570_v11  ;;  %v586_v15 = vmul.f32 %v582_v61, %v566_v10  ;;  %v693_v4 = vld [vmem:[#allocation9] sm:$0xff]  ;;  %v696_v10 = vld [vmem:[#allocation9 + $0x18] sm:$0xff] }
 0x170   : > { %v705_v7 = vld [vmem:[#allocation9 + $0x60] sm:$0xff]  ;;  %v708_v11 = vld [vmem:[#allocation9 + $0x78] sm:$0xff] }
 0x171   : > { %v556_v16 = vpop.permute.xlu1 %555  ;;  %v554_v17 = vpop.permute.xlu0 %553  ;;  %v1357_v18 = vpack.c.bf16 %v588_v13, %v586_v15  ;;  %v1359_v19 = vpack.c.bf16 %v587_v12, %v585_v14  ;;  %v707_v12 = vld [vmem:[#allocation9 + $0x70] sm:$0xff]  ;;  %v698_v13 = vld [vmem:[#allocation9 + $0x28] sm:$0xff]  ;;  %v697_v15 = vld [vmem:[#allocation9 + $0x20] sm:$0xff] }
 0x172   : > { %v710_v14 = vld [vmem:[#allocation9 + $0x88] sm:$0xff] }
 0x173   : > { %1358 = vmatprep.subr.bf16.mxu0 %v1357_v18  ;;  %1383 = vmatprep.subr.bf16.mxu1 %v1357_v18  ;;  %v712_v18 = vld [vmem:[#allocation9 + $0x98] sm:$0xff] }
 0x174   : > { %1360 = vmatpush1.bf16.msra.mxu0 %v1359_v19  ;;  %1397 = vmatpush1.bf16.msra.mxu1 %v1359_v19  ;;  %v699_v19 = vld [vmem:[#allocation9 + $0x30] sm:$0xff] }
 0x175   : > { %v564_v20 = vpop.permute.xlu1 %563  ;;  %v562_v21 = vpop.permute.xlu0 %561 }
 0x176   : > { %v569_v22 = vsel %vm565_vm7, %v556_v16, %v564_v20  ;;  %v573_v23 = vsel %vm565_vm7, %v564_v20, %v556_v16  ;;  %v568_v24 = vsel %vm565_vm7, %v554_v17, %v562_v21  ;;  %v572_v25 = vsel %vm565_vm7, %v562_v21, %v554_v17  ;;  %v709_v16 = vld [vmem:[#allocation9 + $0x80] sm:$0xff]  ;;  %v700_v17 = vld [vmem:[#allocation9 + $0x38] sm:$0xff]  ;;  %v711_v20 = vld [vmem:[#allocation9 + $0x90] sm:$0xff] }
 0x177   : > { %v591_v26 = vmul.f32 %v578_v60, %v573_v23  ;;  %v592_v27 = vmul.f32 %v582_v61, %v569_v22  ;;  %v589_v28 = vmul.f32 %v578_v60, %v572_v25  ;;  %v590_v29 = vmul.f32 %v582_v61, %v568_v24  ;;  %v702_v21 = vld [vmem:[#allocation9 + $0x48] sm:$0xff]  ;;  %v701_v23 = vld [vmem:[#allocation9 + $0x40] sm:$0xff]  ;;  %v704_v25 = vld [vmem:[#allocation9 + $0x58] sm:$0xff] }
 0x178   : > { %v714_v22 = vld [vmem:[#allocation9 + $0xa8] sm:$0xff]  ;;  %v713_v24 = vld [vmem:[#allocation9 + $0xa0] sm:$0xff] }
 0x179   : > { %v604_v31 = vpop.permute.xlu1 %603  ;;  %v602_v32 = vpop.permute.xlu0 %601  ;;  %v1361_v33 = vpack.c.bf16 %v592_v27, %v590_v29  ;;  %v1363_v34 = vpack.c.bf16 %v591_v26, %v589_v28  ;;  %v716_v26 = vld [vmem:[#allocation9 + $0xb8] sm:$0xff]  ;;  %v703_v27 = vld [vmem:[#allocation9 + $0x50] sm:$0xff] }
 0x17a   : > { %v715_v28 = vld [vmem:[#allocation9 + $0xb0] sm:$0xff] }
 0x17b   : > { %1362 = vmatprep.subr.bf16.mxu0 %v1361_v33  ;;  %1384 = vmatprep.subr.bf16.mxu1 %v1361_v33 }
 0x17c   : > { %1364 = vmatpush1.bf16.msra.mxu0 %v1363_v34  ;;  %1398 = vmatpush1.bf16.msra.mxu1 %v1363_v34 }
 0x17d   : > { %v612_v37 = vpop.permute.xlu1 %611  ;;  %v610_v38 = vpop.permute.xlu0 %609 }
 0x17e   : > { %v619_v39 = vsel %vm617_vm8, %v604_v31, %v612_v37  ;;  %v623_v40 = vsel %vm617_vm8, %v612_v37, %v604_v31  ;;  %v618_v41 = vsel %vm617_vm8, %v602_v32, %v610_v38  ;;  %v622_v42 = vsel %vm617_vm8, %v610_v38, %v602_v32 }
 0x17f   : > { %v639_v43 = vmul.f32 %v630_v35, %v619_v39  ;;  %v640_v46 = vmul.f32 %v634_v36, %v623_v40  ;;  %v637_v44 = vmul.f32 %v630_v35, %v618_v41  ;;  %v638_v47 = vmul.f32 %v634_v36, %v622_v42 }
 0x181   : > { %v608_v48 = vpop.permute.xlu1 %607  ;;  %v606_v49 = vpop.permute.xlu0 %605  ;;  %v1365_v50 = vpack.c.bf16 %v640_v46, %v638_v47  ;;  %v1367_v51 = vpack.c.bf16 %v639_v43, %v637_v44 }
 0x183   : > { %1366 = vmatprep.subr.bf16.mxu0 %v1365_v50  ;;  %1385 = vmatprep.subr.bf16.mxu1 %v1365_v50 }
 0x184   : > { %1368 = vmatpush1.bf16.msra.mxu0 %v1367_v51  ;;  %1399 = vmatpush1.bf16.msra.mxu1 %v1367_v51 }
 0x185   : > { %v616_v52 = vpop.permute.xlu1 %615  ;;  %v614_v53 = vpop.permute.xlu0 %613 }
 0x186   : > { %v621_v54 = vsel %vm617_vm8, %v608_v48, %v616_v52  ;;  %v625_v55 = vsel %vm617_vm8, %v616_v52, %v608_v48  ;;  %v620_v56 = vsel %vm617_vm8, %v606_v49, %v614_v53  ;;  %v624_v57 = vsel %vm617_vm8, %v614_v53, %v606_v49 }
 0x187   : > { %v643_v58 = vmul.f32 %v630_v35, %v621_v54  ;;  %v644_v59 = vmul.f32 %v634_v36, %v625_v55  ;;  %v641_v60 = vmul.f32 %v630_v35, %v620_v56  ;;  %v642_v61 = vmul.f32 %v634_v36, %v624_v57 }
 0x189   : > { %v1369_v62 = vpack.c.bf16 %v644_v59, %v642_v61  ;;  %v1371_v63 = vpack.c.bf16 %v643_v58, %v641_v60 }
 0x18b   : > { %1370 = vmatprep.subr.bf16.mxu0 %v1369_v62  ;;  %1386 = vmatprep.subr.bf16.mxu1 %v1369_v62 }
 0x18c   : > { %1372 = vmatpush1.bf16.msra.mxu0 %v1371_v63  ;;  %1400 = vmatpush1.bf16.msra.mxu1 %v1371_v63 }
 0x18f   : > { %947 = vmatmul.mubr.f32.vlgmr.msra.gmra.mrb[0].mxu0 %v693_v4  ;;  %983 = vmatmul.mubr.f32.vlgmr.msra.gmra.mrb[0].mxu1 %v705_v7 }
 0x190   : > { %1288 = vmatprep.mubr.msk.f32.mxu0 %vm845_vm4, %v696_v10  ;;  %1294 = vmatprep.mubr.msk.f32.mxu1 %vm845_vm4, %v708_v11 }
 0x193   : > { %953 = vmatmul.mubr.f32.gmra.mrb[2].mxu0 %v695_v45  ;;  %989 = vmatmul.mubr.f32.gmra.mrb[2].mxu1 %v707_v12 }
 0x194   : > { %1289 = vmatprep.mubr.msk.f32.mxu0 %vm845_vm4, %v698_v13  ;;  %1295 = vmatprep.mubr.msk.f32.mxu1 %vm845_vm4, %v710_v14 }
 0x196   : > { %v793_v29 = vpop.permute.xlu1 %792  ;;  %v788_v30 = vpop.permute.xlu0 %787 }
 0x197   : > { %959 = vmatmul.mubr.f32.gmra.mrb[4].mxu0 %v697_v15  ;;  %995 = vmatmul.mubr.f32.gmra.mrb[4].mxu1 %v709_v16 }
 0x198   : > { %1290 = vmatprep.mubr.msk.f32.mxu0 %vm845_vm4, %v700_v17  ;;  %1296 = vmatprep.mubr.msk.f32.mxu1 %vm845_vm4, %v712_v18 }
 0x19a   : > { %v798_v31 = vpop.permute.xlu1 %797  ;;  %v803_v32 = vpop.permute.xlu0 %802 }
 0x19b   : > { %965 = vmatmul.mubr.f32.gmra.mrb[6].mxu0 %v699_v19  ;;  %1001 = vmatmul.mubr.f32.gmra.mrb[6].mxu1 %v711_v20 }
 0x19c   : > { %1291 = vmatprep.mubr.msk.f32.mxu0 %vm845_vm4, %v702_v21  ;;  %1297 = vmatprep.mubr.msk.f32.mxu1 %vm845_vm4, %v714_v22 }
 0x19e   : > { %v2588_v33 = vpop.permute.xlu1 %807  ;;  %v2590_v34 = vpop.permute.xlu0 %812 }
 0x19f   : > { %971 = vmatmul.mubr.f32.gmra.mrb[8].mxu0 %v701_v23  ;;  %1007 = vmatmul.mubr.f32.gmra.mrb[8].mxu1 %v713_v24 }
 0x1a0   : > { %1292 = vmatprep.mubr.msk.f32.mxu0 %vm845_vm4, %v704_v25  ;;  %1298 = vmatprep.mubr.msk.f32.mxu1 %vm845_vm4, %v716_v26 }
 0x1a2   : > { %v818_v35 = vpop.permute.xlu1 %817  ;;  %v823_v43 = vpop.permute.xlu0 %822 }
 0x1a3   : > { %977 = vmatmul.mubr.f32.gmra.mrb[10].mxu0 %v703_v27  ;;  %1013 = vmatmul.mubr.f32.gmra.mrb[10].mxu1 %v715_v28 }
 0x1a6   : > { %v828_v53 = vpop.permute.xlu1 %827  ;;  %v833_v62 = vpop.permute.xlu0 %832 }
 0x1aa   : > { %v838_v16 = vpop.permute.xlu1 %837 }
 0x262   : > { %v948_v36 = vpop.f32.mrb[0].mxu0  ;;  %v984_v37 = vpop.f32.mrb[0].mxu1 }
 0x263   : > { %v949_v38 = vadd.f32 %v948_v36, %v788_v30  ;;  %v950_v39 = vpop.f32.mrb[1].mxu0  ;;  %v986_v40 = vpop.f32.mrb[1].mxu1  ;;  %v985_v42 = vadd.f32 %v984_v37, %v818_v35 }
 0x264   : > { %v951_v41 = vadd.f32 %v950_v39, %v788_v30  ;;  %v987_v46 = vadd.f32 %v986_v40, %v818_v35 }
 0x265   : > { %1563 = vtanh.f32 %v949_v38 }
 0x266   : > { %v954_v44 = vpop.f32.mrb[2].mxu0  ;;  %v990_v47 = vpop.f32.mrb[2].mxu1  ;;  %1565 = vtanh.f32 %v951_v41 }
 0x267   : > { %v955_v48 = vadd.f32 %v954_v44, %v793_v29  ;;  %v991_v49 = vadd.f32 %v990_v47, %v823_v43  ;;  %v956_v50 = vpop.f32.mrb[3].mxu0  ;;  %v992_v51 = vpop.f32.mrb[3].mxu1  ;;  %1567 = vtanh.f32 %v985_v42 }
 0x268   : > { %v957_v52 = vadd.f32 %v956_v50, %v793_v29  ;;  %1569 = vtanh.f32 %v987_v46  ;;  %v993_v54 = vadd.f32 %v992_v51, %v823_v43  ;;  %v843_v29 = vpop.permute.xlu0 %842 }
 0x269   : > { %1571 = vtanh.f32 %v955_v48 }
 0x26a   : > { %v960_v55 = vpop.f32.mrb[4].mxu0  ;;  %v996_v56 = vpop.f32.mrb[4].mxu1  ;;  %1573 = vtanh.f32 %v991_v49 }
 0x26b   : > { %v961_v57 = vadd.f32 %v960_v55, %v798_v31  ;;  %v962_v58 = vpop.f32.mrb[5].mxu0  ;;  %v998_v59 = vpop.f32.mrb[5].mxu1  ;;  %1575 = vtanh.f32 %v957_v52  ;;  %v997_v60 = vadd.f32 %v996_v56, %v828_v53 }
 0x26c   : > { %v963_v61 = vadd.f32 %v962_v58, %v798_v31  ;;  %v999_v63 = vadd.f32 %v998_v59, %v828_v53 }
 0x26d   : > { %1577 = vtanh.f32 %v961_v57 }
 0x26e   : > { %1579 = vtanh.f32 %v993_v54  ;;  %v966_v4 = vpop.f32.mrb[6].mxu0  ;;  %v1002_v7 = vpop.f32.mrb[6].mxu1 }
 0x26f   : > { %1581 = vtanh.f32 %v963_v61  ;;  %v967_v10 = vadd.f32 %v966_v4, %v803_v32  ;;  %v968_v11 = vpop.f32.mrb[7].mxu0  ;;  %v1004_v45 = vpop.f32.mrb[7].mxu1  ;;  %v1003_v13 = vadd.f32 %v1002_v7, %v833_v62 }
 0x270   : > { %v1564_v12 = vpop.eup %1563  ;;  %1583 = vtanh.f32 %v997_v60  ;;  %v969_v14 = vadd.f32 %v968_v11, %v803_v32  ;;  %v1005_v46 = vadd.f32 %v1004_v45, %v833_v62 }
 0x271   : > { %v1566_v15 = vpop.eup %1565  ;;  %1585 = vtanh.f32 %v967_v10 }
 0x272   : > { %v1568_v17 = vpop.eup %1567  ;;  %1587 = vtanh.f32 %v999_v63  ;;  %v972_v18 = vpop.f32.mrb[8].mxu0 }
 0x273   : > { %v1008_v19 = vpop.f32.mrb[8].mxu1  ;;  %v1570_v20 = vpop.eup %1569  ;;  %1589 = vtanh.f32 %v969_v14  ;;  %v973_v21 = vadd.f32 %v972_v18, %v2588_v33 }
 0x274   : > { %v1009_v22 = vadd.f32 %v1008_v19, %v838_v16  ;;  %v974_v23 = vpop.f32.mrb[9].mxu0  ;;  %v1010_v24 = vpop.f32.mrb[9].mxu1  ;;  %1591 = vtanh.f32 %v1003_v13 }
 0x275   : > { %v1572_v25 = vpop.eup %1571  ;;  %v975_v26 = vadd.f32 %v974_v23, %v2588_v33  ;;  %v1011_v27 = vadd.f32 %v1010_v24, %v838_v16  ;;  %1593 = vtanh.f32 %v973_v21 }
 0x276   : > { %v1574_v28 = vpop.eup %1573  ;;  %1595 = vtanh.f32 %v1009_v22  ;;  %v978_v31 = vpop.f32.mrb[10].mxu0 }
 0x277   : > { %v1576_v30 = vpop.eup %1575  ;;  %v1014_v32 = vpop.f32.mrb[10].mxu1  ;;  %1597 = vtanh.f32 %v975_v26  ;;  %v979_v36 = vadd.f32 %v978_v31, %v2590_v34 }
 0x278   : > { %v1578_v35 = vpop.eup %1577  ;;  %v1015_v37 = vadd.f32 %v1014_v32, %v843_v29  ;;  %v980_v38 = vpop.f32.mrb[11].mxu0  ;;  %1599 = vtanh.f32 %v1011_v27 }
 0x279   : > { %v1016_v39 = vpop.f32.mrb[11].mxu1  ;;  %v1580_v40 = vpop.eup %1579  ;;  %v1047_v41 = vadd.f32 %v1578_v35, %v1568_v17  ;;  %v981_v33 = vadd.f32 %v980_v38, %v2590_v34  ;;  %1601 = vtanh.f32 %v979_v36 }
 0x27a   : > { %v1017_v42 = vadd.f32 %v1016_v39, %v843_v29  ;;  %v1582_v43 = vpop.eup %1581  ;;  %1603 = vtanh.f32 %v1015_v37 }
 0x27b   : > { %v1584_v44 = vpop.eup %1583  ;;  %v1048_v47 = vadd.f32 %v1582_v43, %v1570_v20  ;;  %1605 = vtanh.f32 %v981_v33 }
 0x27c   : > { %v1586_v48 = vpop.eup %1585  ;;  %1607 = vtanh.f32 %v1017_v42 }
 0x27d   : > { %v1588_v49 = vpop.eup %1587  ;;  %v1049_v50 = vadd.f32 %v1586_v48, %v1574_v28  ;;  %1609 = vtanh.f32 %v1005_v46 }
 0x27e   : > { %v1590_v51 = vpop.eup %1589 }
 0x27f   : > { %v1592_v52 = vpop.eup %1591  ;;  %v1050_v53 = vadd.f32 %v1590_v51, %v1580_v40 }
 0x280   : > { %v1594_v54 = vpop.eup %1593 }
 0x281   : > { %v1596_v34 = vpop.eup %1595  ;;  %v1043_v55 = vadd.f32 %v1594_v54, %v1564_v12 }
 0x282   : > { %v1598_v56 = vpop.eup %1597  ;;  %v1055_v57 = vadd.f32 %v1596_v34, %v1047_v41 }
 0x283   : > { %v1600_v58 = vpop.eup %1599  ;;  %v1051_v59 = vadd.f32 %v1584_v44, %v1043_v55  ;;  %v1044_v60 = vadd.f32 %v1598_v56, %v1566_v15 }
 0x284   : > { %v1602_v61 = vpop.eup %1601  ;;  %v1063_v62 = vmul.f32 0.5, %v1055_v57  ;;  %v1056_v63 = vadd.f32 %v1600_v58, %v1048_v47 }
 0x285   : > { %v1604_v4 = vpop.eup %1603  ;;  %v1059_v7 = vmul.f32 0.5, %v1051_v59  ;;  %v1052_v10 = vadd.f32 %v1588_v49, %v1044_v60  ;;  %v1045_v11 = vadd.f32 %v1602_v61, %v1572_v25 }
 0x286   : > { %v1606_v45 = vpop.eup %1605  ;;  %v1071_v13 = vadd.f32 1.5, %v1063_v62  ;;  %v1064_v14 = vmul.f32 0.5, %v1056_v63  ;;  %v1057_v16 = vadd.f32 %v1604_v4, %v1049_v50 }
 0x287   : > { %v1608_v12 = vpop.eup %1607  ;;  %v1067_v17 = vadd.f32 1.5, %v1059_v7  ;;  %v1060_v18 = vmul.f32 0.5, %v1052_v10  ;;  %v1053_v19 = vadd.f32 %v1592_v52, %v1045_v11  ;;  %v1046_v20 = vadd.f32 %v1606_v45, %v1576_v30 }
 0x288   : > { %v1610_v15 = vpop.eup %1609  ;;  %v1079_v21 = vmul.f32 %v1071_v13, %v2370_v9  ;;  %v1072_v22 = vadd.f32 1.5, %v1064_v14  ;;  %v1065_v23 = vmul.f32 0.5, %v1057_v16  ;;  %v1058_v24 = vadd.f32 %v1608_v12, %v1050_v53 }
 0x289   : > { %v1075_v26 = vmul.f32 %v1067_v17, %v2343_v1  ;;  %v1068_v25 = vadd.f32 1.5, %v1060_v18  ;;  %v1061_v27 = vmul.f32 0.5, %v1053_v19  ;;  %v1054_v28 = vadd.f32 %v1610_v15, %v1046_v20 }
 0x28a   : > { %1087 = vst [vmem:[%s409_s15 + $0x20] sm:$0xff] %v1079_v21  ;;  %v1080_v29 = vmul.f32 %v1072_v22, %v2362_v6  ;;  %v1073_v31 = vadd.f32 1.5, %v1065_v23  ;;  %v1066_v32 = vmul.f32 0.5, %v1058_v24 }
 0x28b   : > { %1083 = vst [vmem:[%s409_s15] sm:$0xff] %v1075_v26  ;;  %v1076_v30 = vmul.f32 %v1068_v25, %v2340_v0  ;;  %v1069_v9 = vadd.f32 1.5, %v1061_v27  ;;  %v1062_v35 = vmul.f32 0.5, %v1054_v28 }
 0x28c   : > { %1088 = vst [vmem:[%s409_s15 + $0x28] sm:$0xff] %v1080_v29  ;;  %v1081_v1 = vmul.f32 %v1073_v31, %v2367_v8  ;;  %v1074_v36 = vadd.f32 1.5, %v1066_v32 }
 0x28d   : > { %1084 = vst [vmem:[%s409_s15 + $0x8] sm:$0xff] %v1076_v30  ;;  %v1077_v37 = vmul.f32 %v1069_v9, %v2354_v3  ;;  %v1070_v38 = vadd.f32 1.5, %v1062_v35 }
 0x28e   : > { %1089 = vst [vmem:[%s409_s15 + $0x30] sm:$0xff] %v1081_v1  ;;  %v1082_v0 = vmul.f32 %v1074_v36, %v2359_v5 }
 0x28f   : > { %1085 = vst [vmem:[%s409_s15 + $0x10] sm:$0xff] %v1077_v37  ;;  %v1078_v6 = vmul.f32 %v1070_v38, %v2346_v2 }
 0x290   : > { %1090 = vst [vmem:[%s409_s15 + $0x38] sm:$0xff] %v1082_v0 }
 0x291   : > { %1086 = vst [vmem:[%s409_s15 + $0x18] sm:$0xff] %v1078_v6 }
 0x292   : > { %1742 = shalt.err (!%p1739_p3)
}
 0x293   : > { %s1743_s3 = scalar_lea.hbm %s2609_s29, 1024  ;;  %s1747_s18 = scalar_lea.hbm %s2797_s19, 8192 }
 0x294   : > { %p1744_p13 = scmp.ne.s32.totalorder %s2609_s29, %s1743_s3  ;;  %p1748_p7 = scmp.lt.u32.totalorder %s2609_s29, %s2797_s19 }
 0x295   : > { %p1749_p1 = scmp.lt.u32.totalorder %s1747_s18, %s1743_s3  ;;  %p1751_p12 = scmp.lt.u32.totalorder %s1743_s3, %s2609_s29 }
 0x296   : > { %p1745_p4 = pnand %p1744_p13, %p2798_p0 }
 0x297   : > { %p1750_p9 = por %p1749_p1, %p1748_p7 }
 0x298   : > { %p1746_p5 = pneg %p1745_p4 }
 0x299   : > { %p1752_p8 = por %p1751_p12, %p1750_p9 }
 0x29b   : > { %p1753_p6 = pnand %p1752_p8, %p1746_p5 }
 0x29d   : > { %1756 = shalt.err (!%p1753_p6)
}
 0x29e   : > { %s1904_s30 = smov 256   ;;  %s1905_s0 = smov 1024  }
 0x29f   : > { %s1906_s15 = smov 16  }
 0x2a0   : > { %1411 = dma.vmem_to_hbm [thread:$0]  (%p2798_p0), %s2612_s13, 1024, %s2609_s29, %s1092_s4, %s1904_s30, %s1905_s0, %s1906_s15  }
 0x2a1 PF: > { %s2799_s20 = sld [smem:[#allocation19_spill]]  ;;  %s2800_s14 = sld [smem:[#allocation25_spill]] }
 0x2a2   : > { %p1434_p10 = scmp.ge.s32.totalorder %s1887_s10, 2 }
 0x2a7   : > { %s1122_s23 = sand.u32 1, %s2799_s20   ;;  %p2801_p2 = scmp.ne.s32.totalorder %s2800_s14, 0 }
 0x2a8   : > { %s1123_s9 = scalar_lea.sflag [#allocation5], %s1122_s23 }
 0x2a9   : > { %p1428_p11 = pnand %p1434_p10, %p2801_p2 }
 0x2ab   : > { %1830 = dma.done.wait (!%p1428_p11), %s1123_s9, 1024  }
 0x2ac   : > { %1832 = vsyncadd (!%p1428_p11), %s1123_s9, 4294966272  ;;  %s26_s10 = sadd.s32 1, %s1887_s10   ;;  %s2803_s11 = sld [smem:[#allocation17_spill]] }
 0x2ad   : > { %p2644_p3 = scmp.ge.s32.totalorder %s26_s10, 10   ;;  %s2804_s13 = sld [smem:[#allocation18_spill]] }
 0x2ae   : > { %s2805_s26 = sld [smem:[#allocation28_spill]]  ;;  %s2806_s29 = sld [smem:[#allocation20_spill]] }
 0x2af   : > { %s2807_s4 = sld [smem:[#allocation29_spill]]  ;;  %s2808_s30 = sld [smem:[#allocation23_spill]] }
 0x2b0   : > { %s2809_s7 = sld [smem:[#allocation24_spill]]  ;;  %s2810_s8 = sld [smem:[#allocation26_spill]] }
 0x2b1   : > { %s2811_s9 = sld [smem:[#allocation27_spill]]  ;;  %s2812_s21 = smov %s1839_s22 }
 0x2b2   : > { %s2813_s22 = smov %s2803_s11  ;;  %s2814_s23 = smov %s2835_s16 }
 0x2b3   : > { %s2815_s24 = smov %s1851_s25  ;;  %s2816_s25 = smov %s2804_s13 }
 0x2b4   : > { %s2817_s27 = smov %s1863_s28  ;;  %s2818_s28 = smov %s2806_s29 }
 0x2b5   : > { %s2819_s29 = smov %s2807_s4  ;;  %25 = sbr.rel (!%p2644_p3) target bundleno = 21 (0x15), region = 120 }
 0x2bc   :  { %1128 = vsyncpa [#allocation4], 1 }
 0x2bd   :  { %1130 = vsyncpa [#allocation4 + $0x1], 1 }
 0x2be   :  { %1131 = vsyncpa [#allocation7], 1 }
 0x2bf   :  { %1133 = vsyncpa [#allocation7 + $0x1], 1 }
 0x2c0   :  { %1134 = vsyncpa [#allocation10], 1 }
 0x2c1   :  { %1135 = vsyncpa [#allocation5], 1 }
 0x2c2   :  { %1137 = vsyncpa [#allocation5 + $0x1], 1 }

</bundles_post_ra>
